<compile_context>
chip_gen: v7x
topology: tpu7x:2x2x1
jax: 0.10.0
libtpu: 0.0.40
codegen_flags: <defaults>
</compile_context>

<pallas_src>
import functools
import math

import jax
import jax.numpy as jnp
from jax import lax
from jax.experimental import pallas as pl
from jax.experimental.pallas import tpu as pltpu


def _vmem_limit_bytes():
    """Per-generation scoped VMEM budget (review: derive, don't hardcode 32 MiB)."""
    try:
        cap = int(pltpu.get_tpu_info().vmem_capacity_bytes)
    except Exception:
        cap = 64 * 1024 * 1024          # conservative (v7x physical) fallback
    return max(32 * 1024 * 1024, min(96 * 1024 * 1024, (cap * 3) // 4))


_VMEM_LIMIT = _vmem_limit_bytes()


# ---------------------------------------------------------------------------
# Tile helpers (respect the (8, 128) rule: multiple of align, or the full dim)
# ---------------------------------------------------------------------------
def _row_tile(m, pref=256):
    if m <= pref:
        return m
    return pref if m % 8 == 0 else m


def _lane_tile(n, pref=512):
    if n <= pref:
        return n
    return pref if n % 128 == 0 else n


def _contraction_tile(k, pref=512):
    """Tile for the reduction dim: must divide K exactly (no ragged garbage in the sum)."""
    if k <= pref:
        return k
    best = 0
    t = 128
    while t <= pref:
        if k % t == 0:
            best = t
        t += 128
    return best if best else k


def _heads_per_block(h, dk, d_model):
    """Group heads so the per-step column width is a multiple of 128 (or the full D)."""
    if dk % 128 == 0:
        return 1
    for hb in range(1, h):
        if h % hb == 0 and (hb * dk) % 128 == 0:
            return hb
    return h                              # width == d_model: always a legal block


# ---------------------------------------------------------------------------
# Fused (optional Norm) + Linear (+ optional ReLU) projection kernel.
# Weight is resident (constant index_map); x is read once; up to 3 outputs are
# written from a single matmul against the concatenated weight.
# ---------------------------------------------------------------------------
def _fused_proj_kernel(*refs, n_out, d_out, has_norm, relu, eps, d_in):
    if has_norm:
        x_ref, w_ref, b_ref, alpha_ref, bias_ref = refs[:5]
        out_refs = refs[5:]
    else:
        x_ref, w_ref, b_ref = refs[:3]
        out_refs = refs[3:]

    x = x_ref[...]
    if has_norm:
        # torch semantics: mean / unbiased std over the last axis (two-pass, centered).
        xf = x.astype(jnp.float32)
        mean = jnp.mean(xf, axis=-1, keepdims=True)
        xc = xf - mean
        var = jnp.sum(xc * xc, axis=-1, keepdims=True) * jnp.float32(1.0 / (d_in - 1))
        inv = 1.0 / (jnp.sqrt(var) + jnp.float32(eps))
        xn = (alpha_ref[...].astype(jnp.float32) * (xc * inv)
              + bias_ref[...].astype(jnp.float32))
        x = xn.astype(x_ref.dtype)        # keep the MXU on the storage dtype (bf16-ready)

    acc = jnp.dot(x, w_ref[...], preferred_element_type=jnp.float32)
    acc = acc + b_ref[...].astype(jnp.float32)
    if relu:
        acc = jnp.maximum(acc, 0.0)

    for idx, o_ref in enumerate(out_refs):
        blk = acc if n_out == 1 else acc[:, idx * d_out:(idx + 1) * d_out]
        o_ref[...] = blk.astype(o_ref.dtype)


def fused_projection(x2d, w, b, *, n_out, norm_params=None, relu=False, eps=1e-6,
                     row_tile=256):
    """x2d: (M, D); w: (D, n_out*d_out); b: (n_out*d_out,). Returns an n_out tuple."""
    M, D = x2d.shape
    N = w.shape[1]
    assert N % n_out == 0
    d_out = N // n_out
    tm = _row_tile(M, row_tile)
    grid = (pl.cdiv(M, tm),)

    in_specs = [
        pl.BlockSpec((tm, D), lambda i: (i, 0)),
        pl.BlockSpec((D, N), lambda i: (0, 0)),      # weight resident: DMA'd once
        pl.BlockSpec((1, N), lambda i: (0, 0)),
    ]
    args = [x2d, w, b.reshape(1, N)]
    has_norm = norm_params is not None
    if has_norm:
        alpha, bias = norm_params
        in_specs += [pl.BlockSpec((1, D), lambda i: (0, 0)),
                     pl.BlockSpec((1, D), lambda i: (0, 0))]
        args += [alpha.reshape(1, D), bias.reshape(1, D)]

    out_shapes = tuple(jax.ShapeDtypeStruct((M, d_out), x2d.dtype) for _ in range(n_out))
    out_specs = tuple(pl.BlockSpec((tm, d_out), lambda i: (i, 0)) for _ in range(n_out))

    kernel = functools.partial(_fused_proj_kernel, n_out=n_out, d_out=d_out,
                               has_norm=has_norm, relu=relu, eps=float(eps), d_in=D)
    out = pl.pallas_call(
        kernel,
        out_shape=out_shapes,
        grid_spec=pltpu.PrefetchScalarGridSpec(
            num_scalar_prefetch=0,
            grid=grid,
            in_specs=in_specs,
            out_specs=out_specs,
        ),
        compiler_params=pltpu.CompilerParams(
            dimension_semantics=("parallel",),
            vmem_limit_bytes=_VMEM_LIMIT,
        ),
    )(*args)
    return out


# ---------------------------------------------------------------------------
# K-tiled Linear + bias + residual (used for the attention out-projections and
# FFN linear_2, whose contraction dim is d_ff).
# ---------------------------------------------------------------------------
def _linear_residual_kernel(x_ref, w_ref, b_ref, res_ref, o_ref, acc_ref):
    @pl.when(pl.program_id(2) == 0)
    def _init():
        acc_ref[...] = jnp.zeros_like(acc_ref)

    acc_ref[...] += jnp.dot(x_ref[...], w_ref[...], preferred_element_type=jnp.float32)

    @pl.when(pl.program_id(2) == pl.num_programs(2) - 1)
    def _fini():
        out = (acc_ref[...] + b_ref[...].astype(jnp.float32)
               + res_ref[...].astype(jnp.float32))
        o_ref[...] = out.astype(o_ref.dtype)


def linear_residual(x2d, w, b, residual, *, row_tile=256, col_tile=512, k_tile=512):
    """out = x2d @ w + b + residual.  x2d: (M, K); w: (K, N); residual: (M, N)."""
    M, K = x2d.shape
    N = w.shape[1]
    tm = _row_tile(M, row_tile)
    tn = _lane_tile(N, col_tile)
    # Keep the whole weight resident when small; otherwise tile the contraction dim.
    if K * N * x2d.dtype.itemsize <= 8 * 1024 * 1024:
        tk = K
    else:
        tk = _contraction_tile(K, k_tile)
    grid = (pl.cdiv(M, tm), pl.cdiv(N, tn), K // tk)

    return pl.pallas_call(
        _linear_residual_kernel,
        out_shape=jax.ShapeDtypeStruct((M, N), x2d.dtype),
        grid_spec=pltpu.PrefetchScalarGridSpec(
            num_scalar_prefetch=0,
            grid=grid,
            in_specs=[
                pl.BlockSpec((tm, tk), lambda i, j, k: (i, k)),
                pl.BlockSpec((tk, tn), lambda i, j, k: (k, j)),
                pl.BlockSpec((1, tn), lambda i, j, k: (0, j)),
                pl.BlockSpec((tm, tn), lambda i, j, k: (i, j)),
            ],
            out_specs=pl.BlockSpec((tm, tn), lambda i, j, k: (i, j)),
            scratch_shapes=[pltpu.VMEM((tm, tn), jnp.float32)],
        ),
        compiler_params=pltpu.CompilerParams(
            dimension_semantics=("parallel", "parallel", "arbitrary"),
            vmem_limit_bytes=_VMEM_LIMIT,
        ),
    )(x2d, w, b.reshape(1, N), residual)


# ---------------------------------------------------------------------------
# Scaled dot-product attention over a group of heads.  Q/K/V stay in (B, S, D)
# layout (no transposes); the mask outer product is rebuilt in-kernel; the output
# is written head-concatenated straight into the (B, Sq, D) slab.
# ---------------------------------------------------------------------------
def _attention_kernel(q_ref, k_ref, v_ref, mcol_ref, mrow_ref, o_ref, *, hb, dk, scale):
    # mask.unsqueeze(-1) @ mask.unsqueeze(-2): outer product of the mask vector.
    mask2d = mcol_ref[...].astype(jnp.float32) * mrow_ref[...].astype(jnp.float32)
    masked = mask2d == 0.0
    q_all = q_ref[...]
    k_all = k_ref[...]
    v_all = v_ref[...]
    for h in range(hb):                               # static, small head-group loop
        lo = h * dk
        q = q_all[:, lo:lo + dk]
        k = k_all[:, lo:lo + dk]
        v = v_all[:, lo:lo + dk]
        s = lax.dot_general(q, k, (((1,), (1,)), ((), ())),
                            preferred_element_type=jnp.float32) * jnp.float32(scale)
        s = jnp.where(masked, jnp.float32(-1e9), s)   # masked_fill(mask == 0, -1e9)
        m = jnp.max(s, axis=-1, keepdims=True)
        p = jnp.exp(s - m)
        denom = jnp.sum(p, axis=-1, keepdims=True)
        p = p * pl.reciprocal(denom, approx=True)     # EUP slot
        # TODO(synk): attention-score dropout omitted (eval-mode identity).
        ctx = jnp.dot(p.astype(v.dtype), v, preferred_element_type=jnp.float32)
        o_ref[:, lo:lo + dk] = ctx.astype(o_ref.dtype)


def attention_forward(q, k, v, mask_vec, heads):
    """q: (B, Sq, D); k, v: (B, Sk, D); mask_vec: (B, S) -> (B, Sq, D)."""
    B, Sq, D = q.shape
    Sk = k.shape[1]
    dk = D // heads
    hb = _heads_per_block(heads, dk, D)
    W = hb * dk
    G = heads // hb
    scale = 1.0 / math.sqrt(dk)

    mcol = mask_vec[:, :, None].astype(jnp.float32)   # (B, S, 1)  — tiny, no S^2 in HBM
    mrow = mask_vec[:, None, :].astype(jnp.float32)   # (B, 1, S)

    return pl.pallas_call(
        functools.partial(_attention_kernel, hb=hb, dk=dk, scale=scale),
        out_shape=jax.ShapeDtypeStruct((B, Sq, D), q.dtype),
        grid_spec=pltpu.PrefetchScalarGridSpec(
            num_scalar_prefetch=0,
            grid=(B, G),
            in_specs=[
                pl.BlockSpec((None, Sq, W), lambda b, g: (b, 0, g)),
                pl.BlockSpec((None, Sk, W), lambda b, g: (b, 0, g)),
                pl.BlockSpec((None, Sk, W), lambda b, g: (b, 0, g)),
                pl.BlockSpec((None, Sq, 1), lambda b, g: (b, 0, 0)),
                pl.BlockSpec((None, 1, Sk), lambda b, g: (b, 0, 0)),
            ],
            out_specs=pl.BlockSpec((None, Sq, W), lambda b, g: (b, 0, g)),
        ),
        compiler_params=pltpu.CompilerParams(
            dimension_semantics=("parallel", "parallel"),
            vmem_limit_bytes=_VMEM_LIMIT,
        ),
    )(q, k, v, mcol, mrow)


# ---------------------------------------------------------------------------
# DecoderLayer forward
# ---------------------------------------------------------------------------
def decoder_layer_forward(x, e_outputs, src_mask, trg_mask, params, heads, eps=1e-6):
    B, S, D = x.shape
    Se = e_outputs.shape[1]
    x2d = x.reshape(-1, D)
    e2d = e_outputs.reshape(-1, D)

    # ---- sublayer 1: Norm1 fused into the single QKV matmul; masked self-attention ----
    a1 = params["attn1"]
    w_qkv = jnp.concatenate([a1["wq"], a1["wk"], a1["wv"]], axis=1)
    b_qkv = jnp.concatenate([a1["bq"], a1["bk"], a1["bv"]], axis=0)
    q, k, v = fused_projection(x2d, w_qkv, b_qkv, n_out=3, eps=eps,
                               norm_params=(params["norm1_alpha"], params["norm1_bias"]))
    ctx = attention_forward(q.reshape(B, S, D), k.reshape(B, S, D), v.reshape(B, S, D),
                            trg_mask, heads)
    # dropout_1 = identity (eval mode); out-projection fused with the residual add.
    x2d = linear_residual(ctx.reshape(-1, D), a1["wo"], a1["bo"], x2d)

    # ---- sublayer 2: Norm2 fused into the Q matmul; cross-attention over e_outputs ----
    a2 = params["attn2"]
    (q,) = fused_projection(x2d, a2["wq"], a2["bq"], n_out=1, eps=eps,
                            norm_params=(params["norm2_alpha"], params["norm2_bias"]))
    w_kv = jnp.concatenate([a2["wk"], a2["wv"]], axis=1)
    b_kv = jnp.concatenate([a2["bk"], a2["bv"]], axis=0)
    k, v = fused_projection(e2d, w_kv, b_kv, n_out=2)
    ctx = attention_forward(q.reshape(B, S, D), k.reshape(B, Se, D), v.reshape(B, Se, D),
                            src_mask, heads)
    x2d = linear_residual(ctx.reshape(-1, D), a2["wo"], a2["bo"], x2d)

    # ---- sublayer 3: Norm3 fused into linear_1 (+ReLU); linear_2 fused with residual ----
    ff = params["ff"]
    (h,) = fused_projection(x2d, ff["w1"], ff["b1"], n_out=1, relu=True, eps=eps,
                            norm_params=(params["norm3_alpha"], params["norm3_bias"]))
    x2d = linear_residual(h, ff["w2"], ff["b2"], x2d)
    return x2d.reshape(B, S, D)


# ---------------------------------------------------------------------------
# Pure-JAX reference mirroring the PyTorch forward (eval mode)
# ---------------------------------------------------------------------------
def _ref_norm(x, alpha, bias, eps):
    d = x.shape[-1]
    mean = jnp.mean(x, axis=-1, keepdims=True)
    xc = x - mean
    std = jnp.sqrt(jnp.sum(xc * xc, axis=-1, keepdims=True) / (d - 1))
    return alpha * xc / (std + eps) + bias


def _ref_mha(x_q, x_kv, mask_vec, p, heads):
    B, Sq, D = x_q.shape
    Sk = x_kv.shape[1]
    dk = D // heads
    q = (x_q @ p["wq"] + p["bq"]).reshape(B, Sq, heads, dk).transpose(0, 2, 1, 3)
    k = (x_kv @ p["wk"] + p["bk"]).reshape(B, Sk, heads, dk).transpose(0, 2, 1, 3)
    v = (x_kv @ p["wv"] + p["bv"]).reshape(B, Sk, heads, dk).transpose(0, 2, 1, 3)
    scores = jnp.einsum("bhqd,bhkd->bhqk", q, k) / math.sqrt(dk)
    mask2d = mask_vec[:, :, None] * mask_vec[:, None, :]
    scores = jnp.where(mask2d[:, None, :, :] == 0, -1e9, scores)
    probs = jax.nn.softmax(scores, axis=-1)
    out = jnp.einsum("bhqk,bhkd->bhqd", probs, v)
    concat = out.transpose(0, 2, 1, 3).reshape(B, Sq, D)
    return concat @ p["wo"] + p["bo"]


def _ref_decoder_layer(x, e_outputs, src_mask, trg_mask, params, heads, eps=1e-6):
    x2 = _ref_norm(x, params["norm1_alpha"], params["norm1_bias"], eps)
    x = x + _ref_mha(x2, x2, trg_mask, params["attn1"], heads)
    x2 = _ref_norm(x, params["norm2_alpha"], params["norm2_bias"], eps)
    x = x + _ref_mha(x2, e_outputs, src_mask, params["attn2"], heads)
    x2 = _ref_norm(x, params["norm3_alpha"], params["norm3_bias"], eps)
    h = jnp.maximum(x2 @ params["ff"]["w1"] + params["ff"]["b1"], 0.0)
    return x + (h @ params["ff"]["w2"] + params["ff"]["b2"])


# ---------------------------------------------------------------------------
if __name__ == "__main__":
    B, S, D, H, DFF = 2, 8, 32, 4, 64
    keys = jax.random.split(jax.random.PRNGKey(0), 24)
    kit = iter(keys)

    def lin_params(fan_in, fan_out):
        # Weights stored (in, out); nn.Linear stores (out, in) and computes x @ W.T.
        w = jax.random.normal(next(kit), (fan_in, fan_out), jnp.float32) / math.sqrt(fan_in)
        b = jax.random.normal(next(kit), (fan_out,), jnp.float32) * 0.02
        return w, b

    def mha_params():
        p = {}
        p["wq"], p["bq"] = lin_params(D, D)
        p["wk"], p["bk"] = lin_params(D, D)
        p["wv"], p["bv"] = lin_params(D, D)
        p["wo"], p["bo"] = lin_params(D, D)
        return p

    attn1 = mha_params()
    attn2 = mha_params()
    ff = {}
    ff["w1"], ff["b1"] = lin_params(D, DFF)
    ff["w2"], ff["b2"] = lin_params(DFF, D)

    params = {
        "norm1_alpha": jnp.ones((D,), jnp.float32), "norm1_bias": jnp.zeros((D,), jnp.float32),
        "norm2_alpha": jnp.ones((D,), jnp.float32), "norm2_bias": jnp.zeros((D,), jnp.float32),
        "norm3_alpha": jnp.ones((D,), jnp.float32), "norm3_bias": jnp.zeros((D,), jnp.float32),
        "attn1": attn1, "attn2": attn2, "ff": ff,
    }

    x = jax.random.normal(next(kit), (B, S, D), jnp.float32)
    e_outputs = jax.random.normal(next(kit), (B, S, D), jnp.float32)
    trg_mask = jnp.ones((B, S), jnp.float32).at[1, S - 1].set(0.0)
    src_mask = jnp.ones((B, S), jnp.float32).at[0, 0].set(0.0)

    fwd = jax.jit(functools.partial(decoder_layer_forward, heads=H))
    out = fwd(x, e_outputs, src_mask, trg_mask, params)
    out = jax.block_until_ready(out)

    ref = _ref_decoder_layer(x, e_outputs, src_mask, trg_mask, params, H)
    assert out.shape == x.shape
    assert jnp.allclose(out, ref, atol=1e-2, rtol=1e-2), "mismatch vs reference"

    print("KERNEL_OK")
</pallas_src>

<mosaic_0001>
module attributes {stable_mosaic.version = 11 : i64} {
  func.func @_fused_proj_kernel(%arg0: i32, %arg1: memref<16x32xf32, #tpu.memory_space<vmem>>, %arg2: memref<32x96xf32, #tpu.memory_space<vmem>>, %arg3: memref<1x96xf32, #tpu.memory_space<vmem>>, %arg4: memref<1x32xf32, #tpu.memory_space<vmem>>, %arg5: memref<1x32xf32, #tpu.memory_space<vmem>>, %arg6: memref<16x32xf32, #tpu.memory_space<vmem>>, %arg7: memref<16x32xf32, #tpu.memory_space<vmem>>, %arg8: memref<16x32xf32, #tpu.memory_space<vmem>>) attributes {dimension_semantics = [#tpu.dimension_semantics<parallel>], iteration_bounds = array<i64: 1>, scalar_prefetch = 0 : i64, scratch_operands = 0 : i64, tpu.core_type = #tpu.core_type<tc>, window_params = [{transform_indices = @transform_0, window_bounds = array<i64: 16, 32>}, {pipeline_mode = #tpu.pipeline_mode<synchronous>, transform_indices = @transform_1, window_bounds = array<i64: 32, 96>}, {pipeline_mode = #tpu.pipeline_mode<synchronous>, transform_indices = @transform_2, window_bounds = array<i64: 1, 96>}, {pipeline_mode = #tpu.pipeline_mode<synchronous>, transform_indices = @transform_3, window_bounds = array<i64: 1, 32>}, {pipeline_mode = #tpu.pipeline_mode<synchronous>, transform_indices = @transform_4, window_bounds = array<i64: 1, 32>}, {transform_indices = @transform_5, window_bounds = array<i64: 16, 32>}, {transform_indices = @transform_6, window_bounds = array<i64: 16, 32>}, {transform_indices = @transform_7, window_bounds = array<i64: 16, 32>}]} {
    %c0 = arith.constant 0 : index
    %c0_0 = arith.constant 0 : index
    %0 = vector.load %arg1[%c0, %c0_0] : memref<16x32xf32, #tpu.memory_space<vmem>>, vector<16x32xf32>
    %cst = arith.constant dense<0.000000e+00> : vector<16xf32>
    %1 = vector.multi_reduction <add>, %0, %cst [1] : vector<16x32xf32> to vector<16xf32>
    %2 = vector.shape_cast %1 : vector<16xf32> to vector<16x1xf32>
    %cst_1 = arith.constant 3.200000e+01 : f32
    %3 = vector.broadcast %cst_1 : f32 to vector<16x1xf32>
    %4 = arith.divf %2, %3 : vector<16x1xf32>
    %5 = vector.broadcast %4 : vector<16x1xf32> to vector<16x32xf32>
    %6 = arith.subf %0, %5 : vector<16x32xf32>
    %7 = arith.mulf %6, %6 : vector<16x32xf32>
    %cst_2 = arith.constant dense<0.000000e+00> : vector<16xf32>
    %8 = vector.multi_reduction <add>, %7, %cst_2 [1] : vector<16x32xf32> to vector<16xf32>
    %9 = vector.shape_cast %8 : vector<16xf32> to vector<16x1xf32>
    %cst_3 = arith.constant 0.0322580636 : f32
    %10 = vector.broadcast %cst_3 : f32 to vector<16x1xf32>
    %11 = arith.mulf %9, %10 : vector<16x1xf32>
    %12 = math.sqrt %11 : vector<16x1xf32>
    %cst_4 = arith.constant 9.99999997E-7 : f32
    %13 = vector.broadcast %cst_4 : f32 to vector<16x1xf32>
    %14 = arith.addf %12, %13 : vector<16x1xf32>
    %cst_5 = arith.constant 1.000000e+00 : f32
    %15 = vector.broadcast %cst_5 : f32 to vector<16x1xf32>
    %16 = arith.divf %15, %14 : vector<16x1xf32>
    %c0_6 = arith.constant 0 : index
    %c0_7 = arith.constant 0 : index
    %17 = vector.load %arg4[%c0_6, %c0_7] : memref<1x32xf32, #tpu.memory_space<vmem>>, vector<1x32xf32>
    %18 = vector.broadcast %16 : vector<16x1xf32> to vector<16x32xf32>
    %19 = arith.mulf %6, %18 : vector<16x32xf32>
    %20 = vector.broadcast %17 : vector<1x32xf32> to vector<16x32xf32>
    %21 = arith.mulf %20, %19 : vector<16x32xf32>
    %c0_8 = arith.constant 0 : index
    %c0_9 = arith.constant 0 : index
    %22 = vector.load %arg5[%c0_8, %c0_9] : memref<1x32xf32, #tpu.memory_space<vmem>>, vector<1x32xf32>
    %23 = vector.broadcast %22 : vector<1x32xf32> to vector<16x32xf32>
    %24 = arith.addf %21, %23 : vector<16x32xf32>
    %c0_10 = arith.constant 0 : index
    %c0_11 = arith.constant 0 : index
    %25 = vector.load %arg2[%c0_10, %c0_11] : memref<32x96xf32, #tpu.memory_space<vmem>>, vector<32x96xf32>
    %cst_12 = arith.constant dense<0.000000e+00> : vector<16x96xf32>
    %26 = tpu.matmul %24, %25, %cst_12 {dimension_numbers = #tpu.dot_dimension_numbers<[1], [0], [0], [1], [0, 0, 1, 1], [], []>} : vector<16x32xf32>, vector<32x96xf32>, vector<16x96xf32> -> vector<16x96xf32>
    %c0_13 = arith.constant 0 : index
    %c0_14 = arith.constant 0 : index
    %27 = vector.load %arg3[%c0_13, %c0_14] : memref<1x96xf32, #tpu.memory_space<vmem>>, vector<1x96xf32>
    %28 = vector.broadcast %27 : vector<1x96xf32> to vector<16x96xf32>
    %29 = arith.addf %26, %28 : vector<16x96xf32>
    %30 = vector.extract_strided_slice %29 {offsets = [0, 0], sizes = [16, 32], strides = [1, 1]} : vector<16x96xf32> to vector<16x32xf32>
    %c0_15 = arith.constant 0 : index
    %c0_16 = arith.constant 0 : index
    %31 = vector.load %arg6[%c0_15, %c0_16] : memref<16x32xf32, #tpu.memory_space<vmem>>, vector<16x32xf32>
    tpu.vector_store %arg6[%c0_15, %c0_16], %30 {strides = array<i32>} : memref<16x32xf32, #tpu.memory_space<vmem>>, vector<16x32xf32>,
    %32 = vector.extract_strided_slice %29 {offsets = [0, 32], sizes = [16, 32], strides = [1, 1]} : vector<16x96xf32> to vector<16x32xf32>
    %c0_17 = arith.constant 0 : index
    %c0_18 = arith.constant 0 : index
    %33 = vector.load %arg7[%c0_17, %c0_18] : memref<16x32xf32, #tpu.memory_space<vmem>>, vector<16x32xf32>
    tpu.vector_store %arg7[%c0_17, %c0_18], %32 {strides = array<i32>} : memref<16x32xf32, #tpu.memory_space<vmem>>, vector<16x32xf32>,
    %34 = vector.extract_strided_slice %29 {offsets = [0, 64], sizes = [16, 32], strides = [1, 1]} : vector<16x96xf32> to vector<16x32xf32>
    %c0_19 = arith.constant 0 : index
    %c0_20 = arith.constant 0 : index
    %35 = vector.load %arg8[%c0_19, %c0_20] : memref<16x32xf32, #tpu.memory_space<vmem>>, vector<16x32xf32>
    tpu.vector_store %arg8[%c0_19, %c0_20], %34 {strides = array<i32>} : memref<16x32xf32, #tpu.memory_space<vmem>>, vector<16x32xf32>,
    return
  }
  func.func @transform_0(%arg0: i32) -> (i32, i32) {
    %c0_i32 = arith.constant 0 : i32
    %c0_i32_0 = arith.constant 0 : i32
    return %arg0, %c0_i32 : i32, i32
  }
  func.func @transform_1(%arg0: i32) -> (i32, i32) {
    %c0_i32 = arith.constant 0 : i32
    %c0_i32_0 = arith.constant 0 : i32
    %c0_i32_1 = arith.constant 0 : i32
    return %c0_i32, %c0_i32_0 : i32, i32
  }
  func.func @transform_2(%arg0: i32) -> (i32, i32) {
    %c0_i32 = arith.constant 0 : i32
    %c0_i32_0 = arith.constant 0 : i32
    %c0_i32_1 = arith.constant 0 : i32
    return %c0_i32, %c0_i32_0 : i32, i32
  }
  func.func @transform_3(%arg0: i32) -> (i32, i32) {
    %c0_i32 = arith.constant 0 : i32
    %c0_i32_0 = arith.constant 0 : i32
    %c0_i32_1 = arith.constant 0 : i32
    return %c0_i32, %c0_i32_0 : i32, i32
  }
  func.func @transform_4(%arg0: i32) -> (i32, i32) {
    %c0_i32 = arith.constant 0 : i32
    %c0_i32_0 = arith.constant 0 : i32
    %c0_i32_1 = arith.constant 0 : i32
    return %c0_i32, %c0_i32_0 : i32, i32
  }
  func.func @transform_5(%arg0: i32) -> (i32, i32) {
    %c0_i32 = arith.constant 0 : i32
    %c0_i32_0 = arith.constant 0 : i32
    return %arg0, %c0_i32 : i32, i32
  }
  func.func @transform_6(%arg0: i32) -> (i32, i32) {
    %c0_i32 = arith.constant 0 : i32
    %c0_i32_0 = arith.constant 0 : i32
    return %arg0, %c0_i32 : i32, i32
  }
  func.func @transform_7(%arg0: i32) -> (i32, i32) {
    %c0_i32 = arith.constant 0 : i32
    %c0_i32_0 = arith.constant 0 : i32
    return %arg0, %c0_i32 : i32, i32
  }
}

module attributes {stable_mosaic.version = 11 : i64} {
  func.func @_attention_kernel(%arg0: i32, %arg1: i32, %arg2: memref<1x8x32xf32, #tpu.memory_space<vmem>>, %arg3: memref<1x8x32xf32, #tpu.memory_space<vmem>>, %arg4: memref<1x8x32xf32, #tpu.memory_space<vmem>>, %arg5: memref<1x8x1xf32, #tpu.memory_space<vmem>>, %arg6: memref<1x1x8xf32, #tpu.memory_space<vmem>>, %arg7: memref<1x8x32xf32, #tpu.memory_space<vmem>>) attributes {dimension_semantics = [#tpu.dimension_semantics<parallel>, #tpu.dimension_semantics<parallel>], iteration_bounds = array<i64: 2, 1>, scalar_prefetch = 0 : i64, scratch_operands = 0 : i64, tpu.core_type = #tpu.core_type<tc>, window_params = [{transform_indices = @transform_0, window_bounds = array<i64: 1, 8, 32>}, {transform_indices = @transform_1, window_bounds = array<i64: 1, 8, 32>}, {transform_indices = @transform_2, window_bounds = array<i64: 1, 8, 32>}, {transform_indices = @transform_3, window_bounds = array<i64: 1, 8, 1>}, {transform_indices = @transform_4, window_bounds = array<i64: 1, 1, 8>}, {transform_indices = @transform_5, window_bounds = array<i64: 1, 8, 32>}]} {
    %c0 = arith.constant 0 : index
    %c0_0 = arith.constant 0 : index
    %c0_1 = arith.constant 0 : index
    %0 = vector.load %arg5[%c0, %c0_0, %c0_1] : memref<1x8x1xf32, #tpu.memory_space<vmem>>, vector<1x8x1xf32>
    %1 = vector.shape_cast %0 : vector<1x8x1xf32> to vector<8x1xf32>
    %c0_2 = arith.constant 0 : index
    %c0_3 = arith.constant 0 : index
    %c0_4 = arith.constant 0 : index
    %2 = vector.load %arg6[%c0_2, %c0_3, %c0_4] : memref<1x1x8xf32, #tpu.memory_space<vmem>>, vector<1x1x8xf32>
    %3 = vector.shape_cast %2 : vector<1x1x8xf32> to vector<1x8xf32>
    %4 = vector.broadcast %1 : vector<8x1xf32> to vector<8x8xf32>
    %5 = vector.broadcast %3 : vector<1x8xf32> to vector<8x8xf32>
    %6 = arith.mulf %4, %5 : vector<8x8xf32>
    %cst = arith.constant 0.000000e+00 : f32
    %7 = vector.broadcast %cst : f32 to vector<8x8xf32>
    %8 = arith.cmpf oeq, %6, %7 : vector<8x8xf32>
    %c0_5 = arith.constant 0 : index
    %c0_6 = arith.constant 0 : index
    %c0_7 = arith.constant 0 : index
    %9 = vector.load %arg2[%c0_5, %c0_6, %c0_7] : memref<1x8x32xf32, #tpu.memory_space<vmem>>, vector<1x8x32xf32>
    %10 = vector.shape_cast %9 : vector<1x8x32xf32> to vector<8x32xf32>
    %c0_8 = arith.constant 0 : index
    %c0_9 = arith.constant 0 : index
    %c0_10 = arith.constant 0 : index
    %11 = vector.load %arg3[%c0_8, %c0_9, %c0_10] : memref<1x8x32xf32, #tpu.memory_space<vmem>>, vector<1x8x32xf32>
    %12 = vector.shape_cast %11 : vector<1x8x32xf32> to vector<8x32xf32>
    %c0_11 = arith.constant 0 : index
    %c0_12 = arith.constant 0 : index
    %c0_13 = arith.constant 0 : index
    %13 = vector.load %arg4[%c0_11, %c0_12, %c0_13] : memref<1x8x32xf32, #tpu.memory_space<vmem>>, vector<1x8x32xf32>
    %14 = vector.shape_cast %13 : vector<1x8x32xf32> to vector<8x32xf32>
    %15 = vector.extract_strided_slice %10 {offsets = [0, 0], sizes = [8, 8], strides = [1, 1]} : vector<8x32xf32> to vector<8x8xf32>
    %16 = vector.extract_strided_slice %12 {offsets = [0, 0], sizes = [8, 8], strides = [1, 1]} : vector<8x32xf32> to vector<8x8xf32>
    %17 = vector.extract_strided_slice %14 {offsets = [0, 0], sizes = [8, 8], strides = [1, 1]} : vector<8x32xf32> to vector<8x8xf32>
    %cst_14 = arith.constant dense<0.000000e+00> : vector<8x8xf32>
    %18 = tpu.matmul %15, %16, %cst_14 {dimension_numbers = #tpu.dot_dimension_numbers<[1], [1], [0], [0], [0, 0, 1, 0], [], []>} : vector<8x8xf32>, vector<8x8xf32>, vector<8x8xf32> -> vector<8x8xf32>
    %cst_15 = arith.constant 0.353553385 : f32
    %19 = vector.broadcast %cst_15 : f32 to vector<8x8xf32>
    %20 = arith.mulf %18, %19 : vector<8x8xf32>
    %cst_16 = arith.constant -1.000000e+09 : f32
    %21 = vector.broadcast %cst_16 : f32 to vector<8x8xf32>
    %22 = arith.select %8, %21, %20 : vector<8x8xi1>, vector<8x8xf32>
    %cst_17 = arith.constant dense<0xFF800000> : vector<8xf32>
    %23 = vector.multi_reduction <maximumf>, %22, %cst_17 [1] : vector<8x8xf32> to vector<8xf32>
    %24 = vector.shape_cast %23 : vector<8xf32> to vector<8x1xf32>
    %25 = vector.broadcast %24 : vector<8x1xf32> to vector<8x8xf32>
    %26 = arith.subf %22, %25 : vector<8x8xf32>
    %27 = math.exp %26 : vector<8x8xf32>
    %cst_18 = arith.constant dense<0.000000e+00> : vector<8xf32>
    %28 = vector.multi_reduction <add>, %27, %cst_18 [1] : vector<8x8xf32> to vector<8xf32>
    %29 = vector.shape_cast %28 : vector<8xf32> to vector<8x1xf32>
    %30 = tpu.reciprocal %29 {approx = true} : vector<8x1xf32> -> vector<8x1xf32>
    %31 = vector.broadcast %30 : vector<8x1xf32> to vector<8x8xf32>
    %32 = arith.mulf %27, %31 : vector<8x8xf32>
    %cst_19 = arith.constant dense<0.000000e+00> : vector<8x8xf32>
    %33 = tpu.matmul %32, %17, %cst_19 {dimension_numbers = #tpu.dot_dimension_numbers<[1], [0], [0], [1], [0, 0, 1, 1], [], []>} : vector<8x8xf32>, vector<8x8xf32>, vector<8x8xf32> -> vector<8x8xf32>
    %c0_20 = arith.constant 0 : index
    %c0_21 = arith.constant 0 : index
    %c0_22 = arith.constant 0 : index
    %34 = vector.load %arg7[%c0_20, %c0_21, %c0_22] : memref<1x8x32xf32, #tpu.memory_space<vmem>>, vector<1x8x8xf32>
    %35 = vector.shape_cast %34 : vector<1x8x8xf32> to vector<8x8xf32>
    %36 = vector.shape_cast %33 : vector<8x8xf32> to vector<1x8x8xf32>
    tpu.vector_store %arg7[%c0_20, %c0_21, %c0_22], %36 {strides = array<i32>} : memref<1x8x32xf32, #tpu.memory_space<vmem>>, vector<1x8x8xf32>,
    %37 = vector.extract_strided_slice %10 {offsets = [0, 8], sizes = [8, 8], strides = [1, 1]} : vector<8x32xf32> to vector<8x8xf32>
    %38 = vector.extract_strided_slice %12 {offsets = [0, 8], sizes = [8, 8], strides = [1, 1]} : vector<8x32xf32> to vector<8x8xf32>
    %39 = vector.extract_strided_slice %14 {offsets = [0, 8], sizes = [8, 8], strides = [1, 1]} : vector<8x32xf32> to vector<8x8xf32>
    %cst_23 = arith.constant dense<0.000000e+00> : vector<8x8xf32>
    %40 = tpu.matmul %37, %38, %cst_23 {dimension_numbers = #tpu.dot_dimension_numbers<[1], [1], [0], [0], [0, 0, 1, 0], [], []>} : vector<8x8xf32>, vector<8x8xf32>, vector<8x8xf32> -> vector<8x8xf32>
    %cst_24 = arith.constant 0.353553385 : f32
    %41 = vector.broadcast %cst_24 : f32 to vector<8x8xf32>
    %42 = arith.mulf %40, %41 : vector<8x8xf32>
    %cst_25 = arith.constant -1.000000e+09 : f32
    %43 = vector.broadcast %cst_25 : f32 to vector<8x8xf32>
    %44 = arith.select %8, %43, %42 : vector<8x8xi1>, vector<8x8xf32>
    %cst_26 = arith.constant dense<0xFF800000> : vector<8xf32>
    %45 = vector.multi_reduction <maximumf>, %44, %cst_26 [1] : vector<8x8xf32> to vector<8xf32>
    %46 = vector.shape_cast %45 : vector<8xf32> to vector<8x1xf32>
    %47 = vector.broadcast %46 : vector<8x1xf32> to vector<8x8xf32>
    %48 = arith.subf %44, %47 : vector<8x8xf32>
    %49 = math.exp %48 : vector<8x8xf32>
    %cst_27 = arith.constant dense<0.000000e+00> : vector<8xf32>
    %50 = vector.multi_reduction <add>, %49, %cst_27 [1] : vector<8x8xf32> to vector<8xf32>
    %51 = vector.shape_cast %50 : vector<8xf32> to vector<8x1xf32>
    %52 = tpu.reciprocal %51 {approx = true} : vector<8x1xf32> -> vector<8x1xf32>
    %53 = vector.broadcast %52 : vector<8x1xf32> to vector<8x8xf32>
    %54 = arith.mulf %49, %53 : vector<8x8xf32>
    %cst_28 = arith.constant dense<0.000000e+00> : vector<8x8xf32>
    %55 = tpu.matmul %54, %39, %cst_28 {dimension_numbers = #tpu.dot_dimension_numbers<[1], [0], [0], [1], [0, 0, 1, 1], [], []>} : vector<8x8xf32>, vector<8x8xf32>, vector<8x8xf32> -> vector<8x8xf32>
    %c0_29 = arith.constant 0 : index
    %c0_30 = arith.constant 0 : index
    %c8 = arith.constant 8 : index
    %56 = vector.load %arg7[%c0_29, %c0_30, %c8] : memref<1x8x32xf32, #tpu.memory_space<vmem>>, vector<1x8x8xf32>
    %57 = vector.shape_cast %56 : vector<1x8x8xf32> to vector<8x8xf32>
    %58 = vector.shape_cast %55 : vector<8x8xf32> to vector<1x8x8xf32>
    tpu.vector_store %arg7[%c0_29, %c0_30, %c8], %58 {strides = array<i32>} : memref<1x8x32xf32, #tpu.memory_space<vmem>>, vector<1x8x8xf32>,
    %59 = vector.extract_strided_slice %10 {offsets = [0, 16], sizes = [8, 8], strides = [1, 1]} : vector<8x32xf32> to vector<8x8xf32>
    %60 = vector.extract_strided_slice %12 {offsets = [0, 16], sizes = [8, 8], strides = [1, 1]} : vector<8x32xf32> to vector<8x8xf32>
    %61 = vector.extract_strided_slice %14 {offsets = [0, 16], sizes = [8, 8], strides = [1, 1]} : vector<8x32xf32> to vector<8x8xf32>
    %cst_31 = arith.constant dense<0.000000e+00> : vector<8x8xf32>
    %62 = tpu.matmul %59, %60, %cst_31 {dimension_numbers = #tpu.dot_dimension_numbers<[1], [1], [0], [0], [0, 0, 1, 0], [], []>} : vector<8x8xf32>, vector<8x8xf32>, vector<8x8xf32> -> vector<8x8xf32>
    %cst_32 = arith.constant 0.353553385 : f32
    %63 = vector.broadcast %cst_32 : f32 to vector<8x8xf32>
    %64 = arith.mulf %62, %63 : vector<8x8xf32>
    %cst_33 = arith.constant -1.000000e+09 : f32
    %65 = vector.broadcast %cst_33 : f32 to vector<8x8xf32>
    %66 = arith.select %8, %65, %64 : vector<8x8xi1>, vector<8x8xf32>
    %cst_34 = arith.constant dense<0xFF800000> : vector<8xf32>
    %67 = vector.multi_reduction <maximumf>, %66, %cst_34 [1] : vector<8x8xf32> to vector<8xf32>
    %68 = vector.shape_cast %67 : vector<8xf32> to vector<8x1xf32>
    %69 = vector.broadcast %68 : vector<8x1xf32> to vector<8x8xf32>
    %70 = arith.subf %66, %69 : vector<8x8xf32>
    %71 = math.exp %70 : vector<8x8xf32>
    %cst_35 = arith.constant dense<0.000000e+00> : vector<8xf32>
    %72 = vector.multi_reduction <add>, %71, %cst_35 [1] : vector<8x8xf32> to vector<8xf32>
    %73 = vector.shape_cast %72 : vector<8xf32> to vector<8x1xf32>
    %74 = tpu.reciprocal %73 {approx = true} : vector<8x1xf32> -> vector<8x1xf32>
    %75 = vector.broadcast %74 : vector<8x1xf32> to vector<8x8xf32>
    %76 = arith.mulf %71, %75 : vector<8x8xf32>
    %cst_36 = arith.constant dense<0.000000e+00> : vector<8x8xf32>
    %77 = tpu.matmul %76, %61, %cst_36 {dimension_numbers = #tpu.dot_dimension_numbers<[1], [0], [0], [1], [0, 0, 1, 1], [], []>} : vector<8x8xf32>, vector<8x8xf32>, vector<8x8xf32> -> vector<8x8xf32>
    %c0_37 = arith.constant 0 : index
    %c0_38 = arith.constant 0 : index
    %c16 = arith.constant 16 : index
    %78 = vector.load %arg7[%c0_37, %c0_38, %c16] : memref<1x8x32xf32, #tpu.memory_space<vmem>>, vector<1x8x8xf32>
    %79 = vector.shape_cast %78 : vector<1x8x8xf32> to vector<8x8xf32>
    %80 = vector.shape_cast %77 : vector<8x8xf32> to vector<1x8x8xf32>
    tpu.vector_store %arg7[%c0_37, %c0_38, %c16], %80 {strides = array<i32>} : memref<1x8x32xf32, #tpu.memory_space<vmem>>, vector<1x8x8xf32>,
    %81 = vector.extract_strided_slice %10 {offsets = [0, 24], sizes = [8, 8], strides = [1, 1]} : vector<8x32xf32> to vector<8x8xf32>
    %82 = vector.extract_strided_slice %12 {offsets = [0, 24], sizes = [8, 8], strides = [1, 1]} : vector<8x32xf32> to vector<8x8xf32>
    %83 = vector.extract_strided_slice %14 {offsets = [0, 24], sizes = [8, 8], strides = [1, 1]} : vector<8x32xf32> to vector<8x8xf32>
    %cst_39 = arith.constant dense<0.000000e+00> : vector<8x8xf32>
    %84 = tpu.matmul %81, %82, %cst_39 {dimension_numbers = #tpu.dot_dimension_numbers<[1], [1], [0], [0], [0, 0, 1, 0], [], []>} : vector<8x8xf32>, vector<8x8xf32>, vector<8x8xf32> -> vector<8x8xf32>
    %cst_40 = arith.constant 0.353553385 : f32
    %85 = vector.broadcast %cst_40 : f32 to vector<8x8xf32>
    %86 = arith.mulf %84, %85 : vector<8x8xf32>
    %cst_41 = arith.constant -1.000000e+09 : f32
    %87 = vector.broadcast %cst_41 : f32 to vector<8x8xf32>
    %88 = arith.select %8, %87, %86 : vector<8x8xi1>, vector<8x8xf32>
    %cst_42 = arith.constant dense<0xFF800000> : vector<8xf32>
    %89 = vector.multi_reduction <maximumf>, %88, %cst_42 [1] : vector<8x8xf32> to vector<8xf32>
    %90 = vector.shape_cast %89 : vector<8xf32> to vector<8x1xf32>
    %91 = vector.broadcast %90 : vector<8x1xf32> to vector<8x8xf32>
    %92 = arith.subf %88, %91 : vector<8x8xf32>
    %93 = math.exp %92 : vector<8x8xf32>
    %cst_43 = arith.constant dense<0.000000e+00> : vector<8xf32>
    %94 = vector.multi_reduction <add>, %93, %cst_43 [1] : vector<8x8xf32> to vector<8xf32>
    %95 = vector.shape_cast %94 : vector<8xf32> to vector<8x1xf32>
    %96 = tpu.reciprocal %95 {approx = true} : vector<8x1xf32> -> vector<8x1xf32>
    %97 = vector.broadcast %96 : vector<8x1xf32> to vector<8x8xf32>
    %98 = arith.mulf %93, %97 : vector<8x8xf32>
    %cst_44 = arith.constant dense<0.000000e+00> : vector<8x8xf32>
    %99 = tpu.matmul %98, %83, %cst_44 {dimension_numbers = #tpu.dot_dimension_numbers<[1], [0], [0], [1], [0, 0, 1, 1], [], []>} : vector<8x8xf32>, vector<8x8xf32>, vector<8x8xf32> -> vector<8x8xf32>
    %c0_45 = arith.constant 0 : index
    %c0_46 = arith.constant 0 : index
    %c24 = arith.constant 24 : index
    %100 = vector.load %arg7[%c0_45, %c0_46, %c24] : memref<1x8x32xf32, #tpu.memory_space<vmem>>, vector<1x8x8xf32>
    %101 = vector.shape_cast %100 : vector<1x8x8xf32> to vector<8x8xf32>
    %102 = vector.shape_cast %99 : vector<8x8xf32> to vector<1x8x8xf32>
    tpu.vector_store %arg7[%c0_45, %c0_46, %c24], %102 {strides = array<i32>} : memref<1x8x32xf32, #tpu.memory_space<vmem>>, vector<1x8x8xf32>,
    return
  }
  func.func @transform_0(%arg0: i32, %arg1: i32) -> (i32, i32, i32) {
    %c0_i32 = arith.constant 0 : i32
    %c0_i32_0 = arith.constant 0 : i32
    return %arg0, %c0_i32, %arg1 : i32, i32, i32
  }
  func.func @transform_1(%arg0: i32, %arg1: i32) -> (i32, i32, i32) {
    %c0_i32 = arith.constant 0 : i32
    %c0_i32_0 = arith.constant 0 : i32
    return %arg0, %c0_i32, %arg1 : i32, i32, i32
  }
  func.func @transform_2(%arg0: i32, %arg1: i32) -> (i32, i32, i32) {
    %c0_i32 = arith.constant 0 : i32
    %c0_i32_0 = arith.constant 0 : i32
    return %arg0, %c0_i32, %arg1 : i32, i32, i32
  }
  func.func @transform_3(%arg0: i32, %arg1: i32) -> (i32, i32, i32) {
    %c0_i32 = arith.constant 0 : i32
    %c0_i32_0 = arith.constant 0 : i32
    %c0_i32_1 = arith.constant 0 : i32
    return %arg0, %c0_i32, %c0_i32_0 : i32, i32, i32
  }
  func.func @transform_4(%arg0: i32, %arg1: i32) -> (i32, i32, i32) {
    %c0_i32 = arith.constant 0 : i32
    %c0_i32_0 = arith.constant 0 : i32
    %c0_i32_1 = arith.constant 0 : i32
    return %arg0, %c0_i32, %c0_i32_0 : i32, i32, i32
  }
  func.func @transform_5(%arg0: i32, %arg1: i32) -> (i32, i32, i32) {
    %c0_i32 = arith.constant 0 : i32
    %c0_i32_0 = arith.constant 0 : i32
    return %arg0, %c0_i32, %arg1 : i32, i32, i32
  }
}

module attributes {stable_mosaic.version = 11 : i64} {
  func.func @_fused_proj_kernel(%arg0: i32, %arg1: memref<16x32xf32, #tpu.memory_space<vmem>>, %arg2: memref<32x32xf32, #tpu.memory_space<vmem>>, %arg3: memref<1x32xf32, #tpu.memory_space<vmem>>, %arg4: memref<1x32xf32, #tpu.memory_space<vmem>>, %arg5: memref<1x32xf32, #tpu.memory_space<vmem>>, %arg6: memref<16x32xf32, #tpu.memory_space<vmem>>) attributes {dimension_semantics = [#tpu.dimension_semantics<parallel>], iteration_bounds = array<i64: 1>, scalar_prefetch = 0 : i64, scratch_operands = 0 : i64, tpu.core_type = #tpu.core_type<tc>, window_params = [{transform_indices = @transform_0, window_bounds = array<i64: 16, 32>}, {pipeline_mode = #tpu.pipeline_mode<synchronous>, transform_indices = @transform_1, window_bounds = array<i64: 32, 32>}, {pipeline_mode = #tpu.pipeline_mode<synchronous>, transform_indices = @transform_2, window_bounds = array<i64: 1, 32>}, {pipeline_mode = #tpu.pipeline_mode<synchronous>, transform_indices = @transform_3, window_bounds = array<i64: 1, 32>}, {pipeline_mode = #tpu.pipeline_mode<synchronous>, transform_indices = @transform_4, window_bounds = array<i64: 1, 32>}, {transform_indices = @transform_5, window_bounds = array<i64: 16, 32>}]} {
    %c0 = arith.constant 0 : index
    %c0_0 = arith.constant 0 : index
    %0 = vector.load %arg1[%c0, %c0_0] : memref<16x32xf32, #tpu.memory_space<vmem>>, vector<16x32xf32>
    %cst = arith.constant dense<0.000000e+00> : vector<16xf32>
    %1 = vector.multi_reduction <add>, %0, %cst [1] : vector<16x32xf32> to vector<16xf32>
    %2 = vector.shape_cast %1 : vector<16xf32> to vector<16x1xf32>
    %cst_1 = arith.constant 3.200000e+01 : f32
    %3 = vector.broadcast %cst_1 : f32 to vector<16x1xf32>
    %4 = arith.divf %2, %3 : vector<16x1xf32>
    %5 = vector.broadcast %4 : vector<16x1xf32> to vector<16x32xf32>
    %6 = arith.subf %0, %5 : vector<16x32xf32>
    %7 = arith.mulf %6, %6 : vector<16x32xf32>
    %cst_2 = arith.constant dense<0.000000e+00> : vector<16xf32>
    %8 = vector.multi_reduction <add>, %7, %cst_2 [1] : vector<16x32xf32> to vector<16xf32>
    %9 = vector.shape_cast %8 : vector<16xf32> to vector<16x1xf32>
    %cst_3 = arith.constant 0.0322580636 : f32
    %10 = vector.broadcast %cst_3 : f32 to vector<16x1xf32>
    %11 = arith.mulf %9, %10 : vector<16x1xf32>
    %12 = math.sqrt %11 : vector<16x1xf32>
    %cst_4 = arith.constant 9.99999997E-7 : f32
    %13 = vector.broadcast %cst_4 : f32 to vector<16x1xf32>
    %14 = arith.addf %12, %13 : vector<16x1xf32>
    %cst_5 = arith.constant 1.000000e+00 : f32
    %15 = vector.broadcast %cst_5 : f32 to vector<16x1xf32>
    %16 = arith.divf %15, %14 : vector<16x1xf32>
    %c0_6 = arith.constant 0 : index
    %c0_7 = arith.constant 0 : index
    %17 = vector.load %arg4[%c0_6, %c0_7] : memref<1x32xf32, #tpu.memory_space<vmem>>, vector<1x32xf32>
    %18 = vector.broadcast %16 : vector<16x1xf32> to vector<16x32xf32>
    %19 = arith.mulf %6, %18 : vector<16x32xf32>
    %20 = vector.broadcast %17 : vector<1x32xf32> to vector<16x32xf32>
    %21 = arith.mulf %20, %19 : vector<16x32xf32>
    %c0_8 = arith.constant 0 : index
    %c0_9 = arith.constant 0 : index
    %22 = vector.load %arg5[%c0_8, %c0_9] : memref<1x32xf32, #tpu.memory_space<vmem>>, vector<1x32xf32>
    %23 = vector.broadcast %22 : vector<1x32xf32> to vector<16x32xf32>
    %24 = arith.addf %21, %23 : vector<16x32xf32>
    %c0_10 = arith.constant 0 : index
    %c0_11 = arith.constant 0 : index
    %25 = vector.load %arg2[%c0_10, %c0_11] : memref<32x32xf32, #tpu.memory_space<vmem>>, vector<32x32xf32>
    %cst_12 = arith.constant dense<0.000000e+00> : vector<16x32xf32>
    %26 = tpu.matmul %24, %25, %cst_12 {dimension_numbers = #tpu.dot_dimension_numbers<[1], [0], [0], [1], [0, 0, 1, 1], [], []>} : vector<16x32xf32>, vector<32x32xf32>, vector<16x32xf32> -> vector<16x32xf32>
    %c0_13 = arith.constant 0 : index
    %c0_14 = arith.constant 0 : index
    %27 = vector.load %arg3[%c0_13, %c0_14] : memref<1x32xf32, #tpu.memory_space<vmem>>, vector<1x32xf32>
    %28 = vector.broadcast %27 : vector<1x32xf32> to vector<16x32xf32>
    %29 = arith.addf %26, %28 : vector<16x32xf32>
    %c0_15 = arith.constant 0 : index
    %c0_16 = arith.constant 0 : index
    %30 = vector.load %arg6[%c0_15, %c0_16] : memref<16x32xf32, #tpu.memory_space<vmem>>, vector<16x32xf32>
    tpu.vector_store %arg6[%c0_15, %c0_16], %29 {strides = array<i32>} : memref<16x32xf32, #tpu.memory_space<vmem>>, vector<16x32xf32>,
    return
  }
  func.func @transform_0(%arg0: i32) -> (i32, i32) {
    %c0_i32 = arith.constant 0 : i32
    %c0_i32_0 = arith.constant 0 : i32
    return %arg0, %c0_i32 : i32, i32
  }
  func.func @transform_1(%arg0: i32) -> (i32, i32) {
    %c0_i32 = arith.constant 0 : i32
    %c0_i32_0 = arith.constant 0 : i32
    %c0_i32_1 = arith.constant 0 : i32
    return %c0_i32, %c0_i32_0 : i32, i32
  }
  func.func @transform_2(%arg0: i32) -> (i32, i32) {
    %c0_i32 = arith.constant 0 : i32
    %c0_i32_0 = arith.constant 0 : i32
    %c0_i32_1 = arith.constant 0 : i32
    return %c0_i32, %c0_i32_0 : i32, i32
  }
  func.func @transform_3(%arg0: i32) -> (i32, i32) {
    %c0_i32 = arith.constant 0 : i32
    %c0_i32_0 = arith.constant 0 : i32
    %c0_i32_1 = arith.constant 0 : i32
    return %c0_i32, %c0_i32_0 : i32, i32
  }
  func.func @transform_4(%arg0: i32) -> (i32, i32) {
    %c0_i32 = arith.constant 0 : i32
    %c0_i32_0 = arith.constant 0 : i32
    %c0_i32_1 = arith.constant 0 : i32
    return %c0_i32, %c0_i32_0 : i32, i32
  }
  func.func @transform_5(%arg0: i32) -> (i32, i32) {
    %c0_i32 = arith.constant 0 : i32
    %c0_i32_0 = arith.constant 0 : i32
    return %arg0, %c0_i32 : i32, i32
  }
}

module attributes {stable_mosaic.version = 11 : i64} {
  func.func @_linear_residual_kernel(%arg0: i32, %arg1: i32, %arg2: i32, %arg3: memref<16x32xf32, #tpu.memory_space<vmem>>, %arg4: memref<32x32xf32, #tpu.memory_space<vmem>>, %arg5: memref<1x32xf32, #tpu.memory_space<vmem>>, %arg6: memref<16x32xf32, #tpu.memory_space<vmem>>, %arg7: memref<16x32xf32, #tpu.memory_space<vmem>>, %arg8: memref<16x32xf32, #tpu.memory_space<vmem>>) attributes {dimension_semantics = [#tpu.dimension_semantics<parallel>, #tpu.dimension_semantics<parallel>, #tpu.dimension_semantics<arbitrary>], iteration_bounds = array<i64: 1, 1, 1>, scalar_prefetch = 0 : i64, scratch_operands = 1 : i64, tpu.core_type = #tpu.core_type<tc>, window_params = [{transform_indices = @transform_0, window_bounds = array<i64: 16, 32>}, {transform_indices = @transform_1, window_bounds = array<i64: 32, 32>}, {transform_indices = @transform_2, window_bounds = array<i64: 1, 32>}, {transform_indices = @transform_3, window_bounds = array<i64: 16, 32>}, {transform_indices = @transform_4, window_bounds = array<i64: 16, 32>}]} {
    %c0_i32 = arith.constant 0 : i32
    %0 = arith.cmpi eq, %arg2, %c0_i32 : i32
    %1 = arith.extui %0 : i1 to i32
    %c0_i32_0 = arith.constant 0 : i32
    %2 = arith.cmpi ne, %1, %c0_i32_0 : i32
    scf.if %2 {
      %cst_10 = arith.constant 0.000000e+00 : f32
      %12 = vector.broadcast %cst_10 : f32 to vector<16x32xf32>
      %c0_11 = arith.constant 0 : index
      %c0_12 = arith.constant 0 : index
      %13 = vector.load %arg8[%c0_11, %c0_12] : memref<16x32xf32, #tpu.memory_space<vmem>>, vector<16x32xf32>
      tpu.vector_store %arg8[%c0_11, %c0_12], %12 {strides = array<i32>} : memref<16x32xf32, #tpu.memory_space<vmem>>, vector<16x32xf32>,
    } else {
    }
    %c0 = arith.constant 0 : index
    %c0_1 = arith.constant 0 : index
    %3 = vector.load %arg8[%c0, %c0_1] : memref<16x32xf32, #tpu.memory_space<vmem>>, vector<16x32xf32>
    %c0_2 = arith.constant 0 : index
    %c0_3 = arith.constant 0 : index
    %4 = vector.load %arg3[%c0_2, %c0_3] : memref<16x32xf32, #tpu.memory_space<vmem>>, vector<16x32xf32>
    %c0_4 = arith.constant 0 : index
    %c0_5 = arith.constant 0 : index
    %5 = vector.load %arg4[%c0_4, %c0_5] : memref<32x32xf32, #tpu.memory_space<vmem>>, vector<32x32xf32>
    %cst = arith.constant dense<0.000000e+00> : vector<16x32xf32>
    %6 = tpu.matmul %4, %5, %cst {dimension_numbers = #tpu.dot_dimension_numbers<[1], [0], [0], [1], [0, 0, 1, 1], [], []>} : vector<16x32xf32>, vector<32x32xf32>, vector<16x32xf32> -> vector<16x32xf32>
    %7 = arith.addf %3, %6 : vector<16x32xf32>
    %c0_6 = arith.constant 0 : index
    %c0_7 = arith.constant 0 : index
    %8 = vector.load %arg8[%c0_6, %c0_7] : memref<16x32xf32, #tpu.memory_space<vmem>>, vector<16x32xf32>
    tpu.vector_store %arg8[%c0_6, %c0_7], %7 {strides = array<i32>} : memref<16x32xf32, #tpu.memory_space<vmem>>, vector<16x32xf32>,
    %c0_i32_8 = arith.constant 0 : i32
    %9 = arith.cmpi eq, %arg2, %c0_i32_8 : i32
    %10 = arith.extui %9 : i1 to i32
    %c0_i32_9 = arith.constant 0 : i32
    %11 = arith.cmpi ne, %10, %c0_i32_9 : i32
    scf.if %11 {
      %c0_10 = arith.constant 0 : index
      %c0_11 = arith.constant 0 : index
      %12 = vector.load %arg8[%c0_10, %c0_11] : memref<16x32xf32, #tpu.memory_space<vmem>>, vector<16x32xf32>
      %c0_12 = arith.constant 0 : index
      %c0_13 = arith.constant 0 : index
      %13 = vector.load %arg5[%c0_12, %c0_13] : memref<1x32xf32, #tpu.memory_space<vmem>>, vector<1x32xf32>
      %14 = vector.broadcast %13 : vector<1x32xf32> to vector<16x32xf32>
      %15 = arith.addf %12, %14 : vector<16x32xf32>
      %c0_14 = arith.constant 0 : index
      %c0_15 = arith.constant 0 : index
      %16 = vector.load %arg6[%c0_14, %c0_15] : memref<16x32xf32, #tpu.memory_space<vmem>>, vector<16x32xf32>
      %17 = arith.addf %15, %16 : vector<16x32xf32>
      %c0_16 = arith.constant 0 : index
      %c0_17 = arith.constant 0 : index
      %18 = vector.load %arg7[%c0_16, %c0_17] : memref<16x32xf32, #tpu.memory_space<vmem>>, vector<16x32xf32>
      tpu.vector_store %arg7[%c0_16, %c0_17], %17 {strides = array<i32>} : memref<16x32xf32, #tpu.memory_space<vmem>>, vector<16x32xf32>,
    } else {
    }
    return
  }
  func.func @transform_0(%arg0: i32, %arg1: i32, %arg2: i32) -> (i32, i32) {
    %c0_i32 = arith.constant 0 : i32
    return %arg0, %arg2 : i32, i32
  }
  func.func @transform_1(%arg0: i32, %arg1: i32, %arg2: i32) -> (i32, i32) {
    %c0_i32 = arith.constant 0 : i32
    return %arg2, %arg1 : i32, i32
  }
  func.func @transform_2(%arg0: i32, %arg1: i32, %arg2: i32) -> (i32, i32) {
    %c0_i32 = arith.constant 0 : i32
    %c0_i32_0 = arith.constant 0 : i32
    return %c0_i32, %arg1 : i32, i32
  }
  func.func @transform_3(%arg0: i32, %arg1: i32, %arg2: i32) -> (i32, i32) {
    %c0_i32 = arith.constant 0 : i32
    return %arg0, %arg1 : i32, i32
  }
  func.func @transform_4(%arg0: i32, %arg1: i32, %arg2: i32) -> (i32, i32) {
    %c0_i32 = arith.constant 0 : i32
    return %arg0, %arg1 : i32, i32
  }
}

module attributes {stable_mosaic.version = 11 : i64} {
  func.func @_fused_proj_kernel(%arg0: i32, %arg1: memref<16x32xf32, #tpu.memory_space<vmem>>, %arg2: memref<32x64xf32, #tpu.memory_space<vmem>>, %arg3: memref<1x64xf32, #tpu.memory_space<vmem>>, %arg4: memref<1x32xf32, #tpu.memory_space<vmem>>, %arg5: memref<1x32xf32, #tpu.memory_space<vmem>>, %arg6: memref<16x64xf32, #tpu.memory_space<vmem>>) attributes {dimension_semantics = [#tpu.dimension_semantics<parallel>], iteration_bounds = array<i64: 1>, scalar_prefetch = 0 : i64, scratch_operands = 0 : i64, tpu.core_type = #tpu.core_type<tc>, window_params = [{transform_indices = @transform_0, window_bounds = array<i64: 16, 32>}, {pipeline_mode = #tpu.pipeline_mode<synchronous>, transform_indices = @transform_1, window_bounds = array<i64: 32, 64>}, {pipeline_mode = #tpu.pipeline_mode<synchronous>, transform_indices = @transform_2, window_bounds = array<i64: 1, 64>}, {pipeline_mode = #tpu.pipeline_mode<synchronous>, transform_indices = @transform_3, window_bounds = array<i64: 1, 32>}, {pipeline_mode = #tpu.pipeline_mode<synchronous>, transform_indices = @transform_4, window_bounds = array<i64: 1, 32>}, {transform_indices = @transform_5, window_bounds = array<i64: 16, 64>}]} {
    %c0 = arith.constant 0 : index
    %c0_0 = arith.constant 0 : index
    %0 = vector.load %arg1[%c0, %c0_0] : memref<16x32xf32, #tpu.memory_space<vmem>>, vector<16x32xf32>
    %cst = arith.constant dense<0.000000e+00> : vector<16xf32>
    %1 = vector.multi_reduction <add>, %0, %cst [1] : vector<16x32xf32> to vector<16xf32>
    %2 = vector.shape_cast %1 : vector<16xf32> to vector<16x1xf32>
    %cst_1 = arith.constant 3.200000e+01 : f32
    %3 = vector.broadcast %cst_1 : f32 to vector<16x1xf32>
    %4 = arith.divf %2, %3 : vector<16x1xf32>
    %5 = vector.broadcast %4 : vector<16x1xf32> to vector<16x32xf32>
    %6 = arith.subf %0, %5 : vector<16x32xf32>
    %7 = arith.mulf %6, %6 : vector<16x32xf32>
    %cst_2 = arith.constant dense<0.000000e+00> : vector<16xf32>
    %8 = vector.multi_reduction <add>, %7, %cst_2 [1] : vector<16x32xf32> to vector<16xf32>
    %9 = vector.shape_cast %8 : vector<16xf32> to vector<16x1xf32>
    %cst_3 = arith.constant 0.0322580636 : f32
    %10 = vector.broadcast %cst_3 : f32 to vector<16x1xf32>
    %11 = arith.mulf %9, %10 : vector<16x1xf32>
    %12 = math.sqrt %11 : vector<16x1xf32>
    %cst_4 = arith.constant 9.99999997E-7 : f32
    %13 = vector.broadcast %cst_4 : f32 to vector<16x1xf32>
    %14 = arith.addf %12, %13 : vector<16x1xf32>
    %cst_5 = arith.constant 1.000000e+00 : f32
    %15 = vector.broadcast %cst_5 : f32 to vector<16x1xf32>
    %16 = arith.divf %15, %14 : vector<16x1xf32>
    %c0_6 = arith.constant 0 : index
    %c0_7 = arith.constant 0 : index
    %17 = vector.load %arg4[%c0_6, %c0_7] : memref<1x32xf32, #tpu.memory_space<vmem>>, vector<1x32xf32>
    %18 = vector.broadcast %16 : vector<16x1xf32> to vector<16x32xf32>
    %19 = arith.mulf %6, %18 : vector<16x32xf32>
    %20 = vector.broadcast %17 : vector<1x32xf32> to vector<16x32xf32>
    %21 = arith.mulf %20, %19 : vector<16x32xf32>
    %c0_8 = arith.constant 0 : index
    %c0_9 = arith.constant 0 : index
    %22 = vector.load %arg5[%c0_8, %c0_9] : memref<1x32xf32, #tpu.memory_space<vmem>>, vector<1x32xf32>
    %23 = vector.broadcast %22 : vector<1x32xf32> to vector<16x32xf32>
    %24 = arith.addf %21, %23 : vector<16x32xf32>
    %c0_10 = arith.constant 0 : index
    %c0_11 = arith.constant 0 : index
    %25 = vector.load %arg2[%c0_10, %c0_11] : memref<32x64xf32, #tpu.memory_space<vmem>>, vector<32x64xf32>
    %cst_12 = arith.constant dense<0.000000e+00> : vector<16x64xf32>
    %26 = tpu.matmul %24, %25, %cst_12 {dimension_numbers = #tpu.dot_dimension_numbers<[1], [0], [0], [1], [0, 0, 1, 1], [], []>} : vector<16x32xf32>, vector<32x64xf32>, vector<16x64xf32> -> vector<16x64xf32>
    %c0_13 = arith.constant 0 : index
    %c0_14 = arith.constant 0 : index
    %27 = vector.load %arg3[%c0_13, %c0_14] : memref<1x64xf32, #tpu.memory_space<vmem>>, vector<1x64xf32>
    %28 = vector.broadcast %27 : vector<1x64xf32> to vector<16x64xf32>
    %29 = arith.addf %26, %28 : vector<16x64xf32>
    %cst_15 = arith.constant 0.000000e+00 : f32
    %30 = vector.broadcast %cst_15 : f32 to vector<16x64xf32>
    %31 = arith.maximumf %29, %30 : vector<16x64xf32>
    %c0_16 = arith.constant 0 : index
    %c0_17 = arith.constant 0 : index
    %32 = vector.load %arg6[%c0_16, %c0_17] : memref<16x64xf32, #tpu.memory_space<vmem>>, vector<16x64xf32>
    tpu.vector_store %arg6[%c0_16, %c0_17], %31 {strides = array<i32>} : memref<16x64xf32, #tpu.memory_space<vmem>>, vector<16x64xf32>,
    return
  }
  func.func @transform_0(%arg0: i32) -> (i32, i32) {
    %c0_i32 = arith.constant 0 : i32
    %c0_i32_0 = arith.constant 0 : i32
    return %arg0, %c0_i32 : i32, i32
  }
  func.func @transform_1(%arg0: i32) -> (i32, i32) {
    %c0_i32 = arith.constant 0 : i32
    %c0_i32_0 = arith.constant 0 : i32
    %c0_i32_1 = arith.constant 0 : i32
    return %c0_i32, %c0_i32_0 : i32, i32
  }
  func.func @transform_2(%arg0: i32) -> (i32, i32) {
    %c0_i32 = arith.constant 0 : i32
    %c0_i32_0 = arith.constant 0 : i32
    %c0_i32_1 = arith.constant 0 : i32
    return %c0_i32, %c0_i32_0 : i32, i32
  }
  func.func @transform_3(%arg0: i32) -> (i32, i32) {
    %c0_i32 = arith.constant 0 : i32
    %c0_i32_0 = arith.constant 0 : i32
    %c0_i32_1 = arith.constant 0 : i32
    return %c0_i32, %c0_i32_0 : i32, i32
  }
  func.func @transform_4(%arg0: i32) -> (i32, i32) {
    %c0_i32 = arith.constant 0 : i32
    %c0_i32_0 = arith.constant 0 : i32
    %c0_i32_1 = arith.constant 0 : i32
    return %c0_i32, %c0_i32_0 : i32, i32
  }
  func.func @transform_5(%arg0: i32) -> (i32, i32) {
    %c0_i32 = arith.constant 0 : i32
    %c0_i32_0 = arith.constant 0 : i32
    return %arg0, %c0_i32 : i32, i32
  }
}

module attributes {stable_mosaic.version = 11 : i64} {
  func.func @_linear_residual_kernel(%arg0: i32, %arg1: i32, %arg2: i32, %arg3: memref<16x64xf32, #tpu.memory_space<vmem>>, %arg4: memref<64x32xf32, #tpu.memory_space<vmem>>, %arg5: memref<1x32xf32, #tpu.memory_space<vmem>>, %arg6: memref<16x32xf32, #tpu.memory_space<vmem>>, %arg7: memref<16x32xf32, #tpu.memory_space<vmem>>, %arg8: memref<16x32xf32, #tpu.memory_space<vmem>>) attributes {dimension_semantics = [#tpu.dimension_semantics<parallel>, #tpu.dimension_semantics<parallel>, #tpu.dimension_semantics<arbitrary>], iteration_bounds = array<i64: 1, 1, 1>, scalar_prefetch = 0 : i64, scratch_operands = 1 : i64, tpu.core_type = #tpu.core_type<tc>, window_params = [{transform_indices = @transform_0, window_bounds = array<i64: 16, 64>}, {transform_indices = @transform_1, window_bounds = array<i64: 64, 32>}, {transform_indices = @transform_2, window_bounds = array<i64: 1, 32>}, {transform_indices = @transform_3, window_bounds = array<i64: 16, 32>}, {transform_indices = @transform_4, window_bounds = array<i64: 16, 32>}]} {
    %c0_i32 = arith.constant 0 : i32
    %0 = arith.cmpi eq, %arg2, %c0_i32 : i32
    %1 = arith.extui %0 : i1 to i32
    %c0_i32_0 = arith.constant 0 : i32
    %2 = arith.cmpi ne, %1, %c0_i32_0 : i32
    scf.if %2 {
      %cst_10 = arith.constant 0.000000e+00 : f32
      %12 = vector.broadcast %cst_10 : f32 to vector<16x32xf32>
      %c0_11 = arith.constant 0 : index
      %c0_12 = arith.constant 0 : index
      %13 = vector.load %arg8[%c0_11, %c0_12] : memref<16x32xf32, #tpu.memory_space<vmem>>, vector<16x32xf32>
      tpu.vector_store %arg8[%c0_11, %c0_12], %12 {strides = array<i32>} : memref<16x32xf32, #tpu.memory_space<vmem>>, vector<16x32xf32>,
    } else {
    }
    %c0 = arith.constant 0 : index
    %c0_1 = arith.constant 0 : index
    %3 = vector.load %arg8[%c0, %c0_1] : memref<16x32xf32, #tpu.memory_space<vmem>>, vector<16x32xf32>
    %c0_2 = arith.constant 0 : index
    %c0_3 = arith.constant 0 : index
    %4 = vector.load %arg3[%c0_2, %c0_3] : memref<16x64xf32, #tpu.memory_space<vmem>>, vector<16x64xf32>
    %c0_4 = arith.constant 0 : index
    %c0_5 = arith.constant 0 : index
    %5 = vector.load %arg4[%c0_4, %c0_5] : memref<64x32xf32, #tpu.memory_space<vmem>>, vector<64x32xf32>
    %cst = arith.constant dense<0.000000e+00> : vector<16x32xf32>
    %6 = tpu.matmul %4, %5, %cst {dimension_numbers = #tpu.dot_dimension_numbers<[1], [0], [0], [1], [0, 0, 1, 1], [], []>} : vector<16x64xf32>, vector<64x32xf32>, vector<16x32xf32> -> vector<16x32xf32>
    %7 = arith.addf %3, %6 : vector<16x32xf32>
    %c0_6 = arith.constant 0 : index
    %c0_7 = arith.constant 0 : index
    %8 = vector.load %arg8[%c0_6, %c0_7] : memref<16x32xf32, #tpu.memory_space<vmem>>, vector<16x32xf32>
    tpu.vector_store %arg8[%c0_6, %c0_7], %7 {strides = array<i32>} : memref<16x32xf32, #tpu.memory_space<vmem>>, vector<16x32xf32>,
    %c0_i32_8 = arith.constant 0 : i32
    %9 = arith.cmpi eq, %arg2, %c0_i32_8 : i32
    %10 = arith.extui %9 : i1 to i32
    %c0_i32_9 = arith.constant 0 : i32
    %11 = arith.cmpi ne, %10, %c0_i32_9 : i32
    scf.if %11 {
      %c0_10 = arith.constant 0 : index
      %c0_11 = arith.constant 0 : index
      %12 = vector.load %arg8[%c0_10, %c0_11] : memref<16x32xf32, #tpu.memory_space<vmem>>, vector<16x32xf32>
      %c0_12 = arith.constant 0 : index
      %c0_13 = arith.constant 0 : index
      %13 = vector.load %arg5[%c0_12, %c0_13] : memref<1x32xf32, #tpu.memory_space<vmem>>, vector<1x32xf32>
      %14 = vector.broadcast %13 : vector<1x32xf32> to vector<16x32xf32>
      %15 = arith.addf %12, %14 : vector<16x32xf32>
      %c0_14 = arith.constant 0 : index
      %c0_15 = arith.constant 0 : index
      %16 = vector.load %arg6[%c0_14, %c0_15] : memref<16x32xf32, #tpu.memory_space<vmem>>, vector<16x32xf32>
      %17 = arith.addf %15, %16 : vector<16x32xf32>
      %c0_16 = arith.constant 0 : index
      %c0_17 = arith.constant 0 : index
      %18 = vector.load %arg7[%c0_16, %c0_17] : memref<16x32xf32, #tpu.memory_space<vmem>>, vector<16x32xf32>
      tpu.vector_store %arg7[%c0_16, %c0_17], %17 {strides = array<i32>} : memref<16x32xf32, #tpu.memory_space<vmem>>, vector<16x32xf32>,
    } else {
    }
    return
  }
  func.func @transform_0(%arg0: i32, %arg1: i32, %arg2: i32) -> (i32, i32) {
    %c0_i32 = arith.constant 0 : i32
    return %arg0, %arg2 : i32, i32
  }
  func.func @transform_1(%arg0: i32, %arg1: i32, %arg2: i32) -> (i32, i32) {
    %c0_i32 = arith.constant 0 : i32
    return %arg2, %arg1 : i32, i32
  }
  func.func @transform_2(%arg0: i32, %arg1: i32, %arg2: i32) -> (i32, i32) {
    %c0_i32 = arith.constant 0 : i32
    %c0_i32_0 = arith.constant 0 : i32
    return %c0_i32, %arg1 : i32, i32
  }
  func.func @transform_3(%arg0: i32, %arg1: i32, %arg2: i32) -> (i32, i32) {
    %c0_i32 = arith.constant 0 : i32
    return %arg0, %arg1 : i32, i32
  }
  func.func @transform_4(%arg0: i32, %arg1: i32, %arg2: i32) -> (i32, i32) {
    %c0_i32 = arith.constant 0 : i32
    return %arg0, %arg1 : i32, i32
  }
}

module attributes {stable_mosaic.version = 11 : i64} {
  func.func @_fused_proj_kernel(%arg0: i32, %arg1: memref<16x32xf32, #tpu.memory_space<vmem>>, %arg2: memref<32x64xf32, #tpu.memory_space<vmem>>, %arg3: memref<1x64xf32, #tpu.memory_space<vmem>>, %arg4: memref<16x32xf32, #tpu.memory_space<vmem>>, %arg5: memref<16x32xf32, #tpu.memory_space<vmem>>) attributes {dimension_semantics = [#tpu.dimension_semantics<parallel>], iteration_bounds = array<i64: 1>, scalar_prefetch = 0 : i64, scratch_operands = 0 : i64, tpu.core_type = #tpu.core_type<tc>, window_params = [{transform_indices = @transform_0, window_bounds = array<i64: 16, 32>}, {pipeline_mode = #tpu.pipeline_mode<synchronous>, transform_indices = @transform_1, window_bounds = array<i64: 32, 64>}, {pipeline_mode = #tpu.pipeline_mode<synchronous>, transform_indices = @transform_2, window_bounds = array<i64: 1, 64>}, {transform_indices = @transform_3, window_bounds = array<i64: 16, 32>}, {transform_indices = @transform_4, window_bounds = array<i64: 16, 32>}]} {
    %c0 = arith.constant 0 : index
    %c0_0 = arith.constant 0 : index
    %0 = vector.load %arg1[%c0, %c0_0] : memref<16x32xf32, #tpu.memory_space<vmem>>, vector<16x32xf32>
    %c0_1 = arith.constant 0 : index
    %c0_2 = arith.constant 0 : index
    %1 = vector.load %arg2[%c0_1, %c0_2] : memref<32x64xf32, #tpu.memory_space<vmem>>, vector<32x64xf32>
    %cst = arith.constant dense<0.000000e+00> : vector<16x64xf32>
    %2 = tpu.matmul %0, %1, %cst {dimension_numbers = #tpu.dot_dimension_numbers<[1], [0], [0], [1], [0, 0, 1, 1], [], []>} : vector<16x32xf32>, vector<32x64xf32>, vector<16x64xf32> -> vector<16x64xf32>
    %c0_3 = arith.constant 0 : index
    %c0_4 = arith.constant 0 : index
    %3 = vector.load %arg3[%c0_3, %c0_4] : memref<1x64xf32, #tpu.memory_space<vmem>>, vector<1x64xf32>
    %4 = vector.broadcast %3 : vector<1x64xf32> to vector<16x64xf32>
    %5 = arith.addf %2, %4 : vector<16x64xf32>
    %6 = vector.extract_strided_slice %5 {offsets = [0, 0], sizes = [16, 32], strides = [1, 1]} : vector<16x64xf32> to vector<16x32xf32>
    %c0_5 = arith.constant 0 : index
    %c0_6 = arith.constant 0 : index
    %7 = vector.load %arg4[%c0_5, %c0_6] : memref<16x32xf32, #tpu.memory_space<vmem>>, vector<16x32xf32>
    tpu.vector_store %arg4[%c0_5, %c0_6], %6 {strides = array<i32>} : memref<16x32xf32, #tpu.memory_space<vmem>>, vector<16x32xf32>,
    %8 = vector.extract_strided_slice %5 {offsets = [0, 32], sizes = [16, 32], strides = [1, 1]} : vector<16x64xf32> to vector<16x32xf32>
    %c0_7 = arith.constant 0 : index
    %c0_8 = arith.constant 0 : index
    %9 = vector.load %arg5[%c0_7, %c0_8] : memref<16x32xf32, #tpu.memory_space<vmem>>, vector<16x32xf32>
    tpu.vector_store %arg5[%c0_7, %c0_8], %8 {strides = array<i32>} : memref<16x32xf32, #tpu.memory_space<vmem>>, vector<16x32xf32>,
    return
  }
  func.func @transform_0(%arg0: i32) -> (i32, i32) {
    %c0_i32 = arith.constant 0 : i32
    %c0_i32_0 = arith.constant 0 : i32
    return %arg0, %c0_i32 : i32, i32
  }
  func.func @transform_1(%arg0: i32) -> (i32, i32) {
    %c0_i32 = arith.constant 0 : i32
    %c0_i32_0 = arith.constant 0 : i32
    %c0_i32_1 = arith.constant 0 : i32
    return %c0_i32, %c0_i32_0 : i32, i32
  }
  func.func @transform_2(%arg0: i32) -> (i32, i32) {
    %c0_i32 = arith.constant 0 : i32
    %c0_i32_0 = arith.constant 0 : i32
    %c0_i32_1 = arith.constant 0 : i32
    return %c0_i32, %c0_i32_0 : i32, i32
  }
  func.func @transform_3(%arg0: i32) -> (i32, i32) {
    %c0_i32 = arith.constant 0 : i32
    %c0_i32_0 = arith.constant 0 : i32
    return %arg0, %c0_i32 : i32, i32
  }
  func.func @transform_4(%arg0: i32) -> (i32, i32) {
    %c0_i32 = arith.constant 0 : i32
    %c0_i32_0 = arith.constant 0 : i32
    return %arg0, %c0_i32 : i32, i32
  }
}

</mosaic_0001>

<bundles_post_ra>
// kernel: decoder_layer_forward.9
= control target key start
LH: loop header
LB: loop body
LE: loop exit
PB: predicated region body
PF: predicated region fallthrough
CT: control target
= control target key end

     0   :  { %vm25_vm0 = vcmask 261120   ;;  %s251_s17 = smov 96   ;;  %s252_s20 = smov 64   ;;  %s350_s0 = inlined_call_operand.vmem [shape: f32[16,32], index: 0, kind: input, shape index: {}]   ;;  %s351_s1 = inlined_call_operand.vmem [shape: f32[32,96], index: 1, kind: input, shape index: {}]   ;;  %s352_s3 = inlined_call_operand.vmem [shape: f32[1,32], index: 3, kind: input, shape index: {}]   ;;  %s353_s4 = inlined_call_operand.vmem [shape: f32[1,32], index: 4, kind: input, shape index: {}]   ;;  %s354_s2 = inlined_call_operand.vmem [shape: f32[1,96], index: 2, kind: input, shape index: {}]   ;;  %s355_s5 = inlined_call_operand.vmem [shape: f32[16,32], index: 5, kind: output, shape index: {0}]   ;;  %s356_s6 = inlined_call_operand.vmem [shape: f32[16,32], index: 6, kind: output, shape index: {1}]   ;;  %s357_s7 = inlined_call_operand.vmem [shape: f32[16,32], index: 7, kind: output, shape index: {2}]  }
   0x1   :  { %v23_v0 = vld [vmem:[%s350_s0] sm:$0xff]  ;;  %v24_v1 = vld [vmem:[%s350_s0 + $0x8] sm:$0xff]  ;;  %v89_v16 = vld [vmem:[%s351_s1 + $0x10] sm:$0xff] }
   0x2   :  { %v26_v2 = vsel %vm25_vm0, %v23_v0, 0.0  ;;  %v29_v3 = vsel %vm25_vm0, %v24_v1, 0.0  ;;  %v87_v14 = vld [vmem:[%s351_s1] sm:$0xff]  ;;  %v88_v15 = vld [vmem:[%s351_s1 + $0x8] sm:$0xff]  ;;  %v90_v18 = vld [vmem:[%s351_s1 + $0x18] sm:$0xff] }
   0x3   :  { %27 = vadd.xlane.f32.xlu0 %v26_v2  ;;  %v233_v17 = vpack.c.bf16 %v88_v15, %v87_v14  ;;  %v237_v19 = vpack.c.bf16 %v90_v18, %v89_v16  ;;  %v211_v37 = vld [vmem:[%s352_s3] ss:$0 sm:$0xff] }
   0x4   :  { %v212_v39 = vld [vmem:[%s353_s4] ss:$0 sm:$0xff] }
   0x5   :  { %234 = vmatprep.subr.bf16.mxu0 %v233_v17  ;;  %v213_v46 = vld [vmem:[%s354_s2] ss:$0 sm:$0xff] }
   0x6   :  { %236 = vmatpush3.bf16.msra.mxu0 %v233_v17 }
   0x7   :  { %30 = vadd.xlane.f32.xlu0 %v29_v3  ;;  %238 = vmatprep.subr.bf16.mxu0 %v237_v19 }
   0xa   :  { %240 = vmatpush3.bf16.msra.mxu0 %v237_v19 }
  0x90   :  { %v28_v4 = vpop.xlane.xlu0 %27 }
  0x91   :  { %v33_v5 = vmul.f32 0.03125, %v28_v4 }
  0x93   :  { %v35_v6 = vsub.f32 %v23_v0, %v33_v5 }
  0x94   :  { %v31_v7 = vpop.xlane.xlu0 %30 }
  0x95   :  { %v34_v8 = vmul.f32 0.03125, %v31_v7  ;;  %v37_v9 = vmul.f32 %v35_v6, %v35_v6 }
  0x97   :  { %v36_v10 = vsub.f32 %v24_v1, %v34_v8  ;;  %v39_v11 = vsel %vm25_vm0, %v37_v9, 0.0 }
  0x98   :  { %40 = vadd.xlane.f32.xlu1 %v39_v11 }
  0x99   :  { %v38_v12 = vmul.f32 %v36_v10, %v36_v10 }
  0x9b   :  { %v42_v13 = vsel %vm25_vm0, %v38_v12, 0.0 }
  0x9c   :  { %43 = vadd.xlane.f32.xlu1 %v42_v13 }
 0x125   :  { %v41_v20 = vpop.xlane.xlu1 %40 }
 0x126   :  { %v45_v21 = vmul.f32 0.032258064, %v41_v20 }
 0x128   :  { %243 = vrsqrt.f32 %v45_v21  ;;  %vm49_vm1 = vcmp.eq.f32.partialorder %v45_v21, inf  ;;  %v52_v26 = vand.u32 2147483648, %v45_v21  ;;  %vm51_vm2 = vcmp.eq.f32.partialorder %v45_v21, 0.0 }
 0x129   :  { %v44_v22 = vpop.xlane.xlu1 %43 }
 0x12a   :  { %v46_v23 = vmul.f32 0.032258064, %v44_v22 }
 0x12c   :  { %245 = vrsqrt.f32 %v46_v23  ;;  %vm56_vm3 = vcmp.eq.f32.partialorder %v46_v23, inf  ;;  %v59_v32 = vand.u32 2147483648, %v46_v23  ;;  %vm58_vm4 = vcmp.eq.f32.partialorder %v46_v23, 0.0 }
 0x132   :  { %v244_v24 = vpop.eup %243 }
 0x133   :  { %v48_v25 = vmul.f32 %v244_v24, %v45_v21 }
 0x135   :  { %v50_v27 = vsel %vm49_vm1, %v45_v21, %v48_v25 }
 0x136   :  { %v246_v28 = vpop.eup %245  ;;  %v53_v29 = vsel %vm51_vm2, %v52_v26, %v50_v27 }
 0x137   :  { %v55_v30 = vmul.f32 %v246_v28, %v46_v23  ;;  %v61_v31 = vadd.f32 1e-06, %v53_v29 }
 0x139   :  { %v57_v33 = vsel %vm56_vm3, %v46_v23, %v55_v30  ;;  %247 = vrcp.f32 %v61_v31 }
 0x13a   :  { %v60_v34 = vsel %vm58_vm4, %v59_v32, %v57_v33 }
 0x13b   :  { %v62_v35 = vadd.f32 1e-06, %v60_v34 }
 0x13d   :  { %249 = vrcp.f32 %v62_v35 }
 0x143   :  { %v248_v36 = vpop.eup %247 }
 0x144   :  { %v68_v38 = vmul.f32 %v248_v36, %v35_v6 }
 0x146   :  { %v76_v40 = vmul.f32 %v211_v37, %v68_v38 }
 0x147   :  { %v250_v41 = vpop.eup %249 }
 0x148   :  { %v69_v42 = vmul.f32 %v250_v41, %v36_v10  ;;  %v85_v43 = vadd.f32 %v212_v39, %v76_v40 }
 0x14a   :  { %v77_v44 = vmul.f32 %v211_v37, %v69_v42  ;;  %230 = vmatprep.mubr.msk.f32.mxu0 %vm25_vm0, %v85_v43 }
 0x14c   :  { %v86_v45 = vadd.f32 %v212_v39, %v77_v44 }
 0x14e   :  { %231 = vmatmul.mubr.msk.f32.vlgmr.msra.gmra.mrb[0].mxu0 %vm25_vm0, %v86_v45 }
 0x221   :  { %v232_v47 = vpop.f32.mrb[0].mxu0 }
 0x222   :  { %v176_v48 = vadd.f32 %v232_v47, %v213_v46  ;;  %v170_v49 = vpop.f32.mrb[1].mxu0 }
 0x223   :  { %v171_v50 = vadd.f32 %v213_v46, %v170_v49 }
 0x224   :  { %180 = vst.msk [vmem:[%s355_s5 + $0x8] sm:$0xff] %vm25_vm0, %v176_v48  ;;  %185 = vrot.lane.b32.xlu1 %v176_v48, %s251_s17 }
 0x225   :  { %179 = vst.msk [vmem:[%s355_s5] sm:$0xff] %vm25_vm0, %v171_v50  ;;  %183 = vrot.lane.b32.xlu0 %v171_v50, %s251_s17 }
 0x228   :  { %191 = vrot.lane.b32.xlu1 %v171_v50, %s252_s20 }
 0x22c   :  { %193 = vrot.lane.b32.xlu1 %v176_v48, %s252_s20 }
 0x296   :  { %v186_v51 = vpop.permute.xlu1 %185 }
 0x297   :  { %190 = vst.msk [vmem:[%s356_s6 + $0x8] sm:$0xff] %vm25_vm0, %v186_v51  ;;  %v184_v52 = vpop.permute.xlu0 %183 }
 0x298   :  { %189 = vst.msk [vmem:[%s356_s6] sm:$0xff] %vm25_vm0, %v184_v52 }
 0x29a   :  { %v192_v53 = vpop.permute.xlu1 %191 }
 0x29b   :  { %197 = vst.msk [vmem:[%s357_s7] sm:$0xff] %vm25_vm0, %v192_v53 }
 0x29e   :  { %v194_v54 = vpop.permute.xlu1 %193 }
 0x29f   :  { %198 = vst.msk [vmem:[%s357_s7 + $0x8] sm:$0xff] %vm25_vm0, %v194_v54 }

// kernel: decoder_layer_forward.12
= control target key start
LH: loop header
LB: loop body
LE: loop exit
PB: predicated region body
PF: predicated region fallthrough
CT: control target
= control target key end

     0   :  { %vm22_vm0 = vcmask 261120   ;;  %s291_s0 = inlined_call_operand.vmem [shape: f32[16,32], index: 0, kind: input, shape index: {}]   ;;  %s292_s1 = inlined_call_operand.vmem [shape: f32[32,32], index: 1, kind: input, shape index: {}]   ;;  %s293_s3 = inlined_call_operand.vmem [shape: f32[1,32], index: 3, kind: input, shape index: {}]   ;;  %s294_s4 = inlined_call_operand.vmem [shape: f32[1,32], index: 4, kind: input, shape index: {}]   ;;  %s295_s2 = inlined_call_operand.vmem [shape: f32[1,32], index: 2, kind: input, shape index: {}]   ;;  %s296_s5 = inlined_call_operand.vmem [shape: f32[16,32], index: 5, kind: output, shape index: {}]  }
   0x1   :  { %v20_v0 = vld [vmem:[%s291_s0] sm:$0xff]  ;;  %v21_v1 = vld [vmem:[%s291_s0 + $0x8] sm:$0xff]  ;;  %v86_v16 = vld [vmem:[%s292_s1 + $0x10] sm:$0xff] }
   0x2   :  { %v23_v2 = vsel %vm22_vm0, %v20_v0, 0.0  ;;  %v26_v3 = vsel %vm22_vm0, %v21_v1, 0.0  ;;  %v84_v14 = vld [vmem:[%s292_s1] sm:$0xff]  ;;  %v85_v15 = vld [vmem:[%s292_s1 + $0x8] sm:$0xff]  ;;  %v87_v18 = vld [vmem:[%s292_s1 + $0x18] sm:$0xff] }
   0x3   :  { %24 = vadd.xlane.f32.xlu0 %v23_v2  ;;  %v204_v17 = vpack.c.bf16 %v85_v15, %v84_v14  ;;  %v208_v19 = vpack.c.bf16 %v87_v18, %v86_v16  ;;  %v182_v37 = vld [vmem:[%s293_s3] ss:$0 sm:$0xff] }
   0x4   :  { %v183_v39 = vld [vmem:[%s294_s4] ss:$0 sm:$0xff] }
   0x5   :  { %205 = vmatprep.subr.bf16.mxu0 %v204_v17  ;;  %v184_v46 = vld [vmem:[%s295_s2] ss:$0 sm:$0xff] }
   0x6   :  { %207 = vmatpush3.bf16.msra.mxu0 %v204_v17 }
   0x7   :  { %27 = vadd.xlane.f32.xlu0 %v26_v3  ;;  %209 = vmatprep.subr.bf16.mxu0 %v208_v19 }
   0xa   :  { %211 = vmatpush3.bf16.msra.mxu0 %v208_v19 }
  0x90   :  { %v25_v4 = vpop.xlane.xlu0 %24 }
  0x91   :  { %v30_v5 = vmul.f32 0.03125, %v25_v4 }
  0x93   :  { %v32_v6 = vsub.f32 %v20_v0, %v30_v5 }
  0x94   :  { %v28_v7 = vpop.xlane.xlu0 %27 }
  0x95   :  { %v31_v8 = vmul.f32 0.03125, %v28_v7  ;;  %v34_v9 = vmul.f32 %v32_v6, %v32_v6 }
  0x97   :  { %v33_v10 = vsub.f32 %v21_v1, %v31_v8  ;;  %v36_v11 = vsel %vm22_vm0, %v34_v9, 0.0 }
  0x98   :  { %37 = vadd.xlane.f32.xlu1 %v36_v11 }
  0x99   :  { %v35_v12 = vmul.f32 %v33_v10, %v33_v10 }
  0x9b   :  { %v39_v13 = vsel %vm22_vm0, %v35_v12, 0.0 }
  0x9c   :  { %40 = vadd.xlane.f32.xlu1 %v39_v13 }
 0x125   :  { %v38_v20 = vpop.xlane.xlu1 %37 }
 0x126   :  { %v42_v21 = vmul.f32 0.032258064, %v38_v20 }
 0x128   :  { %212 = vrsqrt.f32 %v42_v21  ;;  %vm46_vm1 = vcmp.eq.f32.partialorder %v42_v21, inf  ;;  %v49_v26 = vand.u32 2147483648, %v42_v21  ;;  %vm48_vm2 = vcmp.eq.f32.partialorder %v42_v21, 0.0 }
 0x129   :  { %v41_v22 = vpop.xlane.xlu1 %40 }
 0x12a   :  { %v43_v23 = vmul.f32 0.032258064, %v41_v22 }
 0x12c   :  { %214 = vrsqrt.f32 %v43_v23  ;;  %vm53_vm3 = vcmp.eq.f32.partialorder %v43_v23, inf  ;;  %v56_v32 = vand.u32 2147483648, %v43_v23  ;;  %vm55_vm4 = vcmp.eq.f32.partialorder %v43_v23, 0.0 }
 0x132   :  { %v213_v24 = vpop.eup %212 }
 0x133   :  { %v45_v25 = vmul.f32 %v213_v24, %v42_v21 }
 0x135   :  { %v47_v27 = vsel %vm46_vm1, %v42_v21, %v45_v25 }
 0x136   :  { %v215_v28 = vpop.eup %214  ;;  %v50_v29 = vsel %vm48_vm2, %v49_v26, %v47_v27 }
 0x137   :  { %v52_v30 = vmul.f32 %v215_v28, %v43_v23  ;;  %v58_v31 = vadd.f32 1e-06, %v50_v29 }
 0x139   :  { %v54_v33 = vsel %vm53_vm3, %v43_v23, %v52_v30  ;;  %216 = vrcp.f32 %v58_v31 }
 0x13a   :  { %v57_v34 = vsel %vm55_vm4, %v56_v32, %v54_v33 }
 0x13b   :  { %v59_v35 = vadd.f32 1e-06, %v57_v34 }
 0x13d   :  { %218 = vrcp.f32 %v59_v35 }
 0x143   :  { %v217_v36 = vpop.eup %216 }
 0x144   :  { %v65_v38 = vmul.f32 %v217_v36, %v32_v6 }
 0x146   :  { %v73_v40 = vmul.f32 %v182_v37, %v65_v38 }
 0x147   :  { %v219_v41 = vpop.eup %218 }
 0x148   :  { %v66_v42 = vmul.f32 %v219_v41, %v33_v10  ;;  %v82_v43 = vadd.f32 %v183_v39, %v73_v40 }
 0x14a   :  { %v74_v44 = vmul.f32 %v182_v37, %v66_v42  ;;  %201 = vmatprep.mubr.msk.f32.mxu0 %vm22_vm0, %v82_v43 }
 0x14c   :  { %v83_v45 = vadd.f32 %v183_v39, %v74_v44 }
 0x14e   :  { %202 = vmatmul.mubr.msk.f32.vlgmr.msra.gmra.mrb[0].mxu0 %vm22_vm0, %v83_v45 }
 0x221   :  { %v203_v47 = vpop.f32.mrb[0].mxu0 }
 0x222   :  { %v173_v48 = vadd.f32 %v203_v47, %v184_v46  ;;  %v167_v49 = vpop.f32.mrb[1].mxu0 }
 0x223   :  { %v168_v50 = vadd.f32 %v184_v46, %v167_v49 }
 0x224   :  { %177 = vst.msk [vmem:[%s296_s5 + $0x8] sm:$0xff] %vm22_vm0, %v173_v48 }
 0x225   :  { %176 = vst.msk [vmem:[%s296_s5] sm:$0xff] %vm22_vm0, %v168_v50 }

// kernel: decoder_layer_forward.11
= control target key start
LH: loop header
LB: loop body
LE: loop exit
PB: predicated region body
PF: predicated region fallthrough
CT: control target
= control target key end

     0   :  { %vm21_vm0 = vcmask 261120   ;;  %v171_v3 = vmov 0.0   ;;  %s238_s1 = inlined_call_operand.vmem [shape: f32[32,32], index: 1, kind: input, shape index: {}]   ;;  %s239_s0 = inlined_call_operand.vmem [shape: f32[16,32], index: 0, kind: input, shape index: {}]   ;;  %s240_s2 = inlined_call_operand.vmem [shape: f32[1,32], index: 2, kind: input, shape index: {}]   ;;  %s241_s3 = inlined_call_operand.vmem [shape: f32[16,32], index: 3, kind: input, shape index: {}]   ;;  %s242_s4 = inlined_call_operand.vmem [shape: f32[16,32], index: 4, kind: output, shape index: {}]  }
   0x1   :  { %v28_v0 = vld [vmem:[%s238_s1] sm:$0xff]  ;;  %v29_v1 = vld [vmem:[%s238_s1 + $0x8] sm:$0xff]  ;;  %v30_v2 = vld [vmem:[%s238_s1 + $0x10] sm:$0xff]  ;;  %23 = vst.msk [vmem:[#allocation2 + $0x8] sm:$0xff] %vm21_vm0, %v171_v3 }
   0x2   :  { %22 = vst.msk [vmem:[#allocation2] sm:$0xff] %vm21_vm0, %v171_v3  ;;  %v162_v4 = vpack.c.bf16 %v29_v1, %v28_v0  ;;  %v31_v5 = vld [vmem:[%s238_s1 + $0x18] sm:$0xff]  ;;  %v26_v6 = vld [vmem:[%s239_s0] sm:$0xff]  ;;  %v27_v8 = vld [vmem:[%s239_s0 + $0x8] sm:$0xff] }
   0x3   :  { %v166_v7 = vpack.c.bf16 %v31_v5, %v30_v2  ;;  %159 = vmatprep.mubr.msk.f32.mxu0 %vm21_vm0, %v26_v6  ;;  %v144_v15 = vld [vmem:[%s240_s2] ss:$0 sm:$0xff]  ;;  %v133_v17 = vld [vmem:[%s241_s3 + $0x8] sm:$0xff] }
   0x4   :  { %163 = vmatprep.subr.bf16.mxu0 %v162_v4  ;;  %v132_v20 = vld [vmem:[%s241_s3] sm:$0xff] }
   0x5   :  { %165 = vmatpush3.bf16.msra.mxu0 %v162_v4 }
   0x6   :  { %167 = vmatprep.subr.bf16.mxu0 %v166_v7 }
   0x8   :  { %v25_v9 = vld [vmem:[#allocation2 + $0x8] sm:$0xff] }
   0x9   :  { %169 = vmatpush3.bf16.msra.mxu0 %v166_v7  ;;  %v24_v10 = vld [vmem:[#allocation2] sm:$0xff] }
   0xc   :  { %160 = vmatmul.mubr.msk.f32.vlgmr.msra.gmra.mrb[0].mxu0 %vm21_vm0, %v27_v8 }
  0xdf   :  { %v161_v11 = vpop.f32.mrb[0].mxu0 }
  0xe0   :  { %v115_v12 = vadd.f32 %v161_v11, %v25_v9  ;;  %v105_v13 = vpop.f32.mrb[1].mxu0 }
  0xe1   :  { %v114_v14 = vadd.f32 %v105_v13, %v24_v10 }
  0xe2   :  { %117 = vst.msk [vmem:[#allocation2 + $0x8] sm:$0xff] %vm21_vm0, %v115_v12 }
  0xe3   :  { %116 = vst.msk [vmem:[#allocation2] sm:$0xff] %vm21_vm0, %v114_v14 }
  0xe9   :  { %v122_v16 = vld [vmem:[#allocation2 + $0x8] sm:$0xff] }
  0xea   :  { %v131_v18 = vadd.f32 %v144_v15, %v122_v16  ;;  %v121_v19 = vld [vmem:[#allocation2] sm:$0xff] }
  0xeb   :  { %v130_v21 = vadd.f32 %v144_v15, %v121_v19 }
  0xec   :  { %v135_v22 = vadd.f32 %v133_v17, %v131_v18 }
  0xed   :  { %v134_v23 = vadd.f32 %v132_v20, %v130_v21 }
  0xee   :  { %137 = vst.msk [vmem:[%s242_s4 + $0x8] sm:$0xff] %vm21_vm0, %v135_v22 }
  0xef   :  { %136 = vst.msk [vmem:[%s242_s4] sm:$0xff] %vm21_vm0, %v134_v23 }

// kernel: decoder_layer_forward.10
= control target key start
LH: loop header
LB: loop body
LE: loop exit
PB: predicated region body
PF: predicated region fallthrough
CT: control target
= control target key end

     0   :  { %s1359_s18 = smov 0   ;;  %s1361_s19 = smov 0   ;;  %s1488_s0 = inlined_call_operand.vmem [shape: f32[2,8,32], index: 0, kind: input, shape index: {}]   ;;  %s1489_s1 = inlined_call_operand.vmem [shape: f32[2,8,32], index: 1, kind: input, shape index: {}]   ;;  %s1490_s2 = inlined_call_operand.vmem [shape: f32[2,8,32], index: 2, kind: input, shape index: {}]   ;;  %s1491_s3 = inlined_call_operand.vmem [shape: f32[2,8,1], index: 3, kind: input, shape index: {}]   ;;  %s1492_s4 = inlined_call_operand.vmem [shape: f32[2,1,8], index: 4, kind: input, shape index: {}]   ;;  %s1493_s5 = inlined_call_operand.vmem [shape: f32[2,8,32], index: 5, kind: output, shape index: {}]  }
   0x1   :  { %s1363_s20 = smov 0  }
   0x2 LB: > { %s27_s21 = sadd.s32 1, %s1314_s19  ;;  %p1169_p0 = scmp.ge.s32.totalorder %s1318_s20, 1  ;;  %s1318_s20 = sphi %s1363_s20, %s15_s20   ;;  %s1314_s19 = sphi %s1361_s19, %s1495_s19   ;;  %s1310_s18 = sphi %s1359_s18, %s1494_s18  }
   0x3   : > { %p29_p1 = scmp.ge.s32.totalorder %s27_s21, 2  ;;  %p250_p2 = scmp.lt.s32.totalorder %s1318_s20, 3 }
   0x5   : > { %s1497_s21 = smov (%p29_p1, %s27_s21), 0  ;;  %p251_p3 = pnand %p1169_p0, %p250_p2 }
   0x6   : > { %p303_p4 = scmp.lt.s32.totalorder (!%p251_p3), %s1310_s18, 1  ;;  %v1320_v0 = vmov (!%p251_p3), 0.0   ;;  %vm1321_vm0 = vmmov (!%p251_p3), 0   ;;  %v1322_v1 = vmov (!%p251_p3), 0   ;;  %vm356_vm1 = vcmask (!%p251_p3), 64512   ;;  %s1323_s7 = smov (!%p251_p3), 120  }
   0x7   : > { %254 = sbr.rel (%p251_p3) target bundleno = 1419 (0x58b), region = 40  ;;  %1206 = vmatprep.subr.mxu0 (!%p251_p3), %v1320_v0  ;;  %1208 = vmatprep.mubr.msk.f32.mxu0 (!%p251_p3), %vm1321_vm0, %v1320_v0  ;;  %s1324_s8 = smov (!%p251_p3), 112   ;;  %vm692_vm3 = vcmask (!%p251_p3), 130112   ;;  %vm865_vm4 = vcmask (!%p251_p3), 195712   ;;  %vm1038_vm5 = vcmask (!%p251_p3), 261312  }
   0x8   : > { %1279 = vset.pattern.permute.xlu0 (!%p251_p3), %v1322_v1  ;;  %1211 = vmatprep.subr.mxu1 (!%p251_p3), %v1320_v0  ;;  %s1325_s12 = smov (!%p251_p3), 104   ;;  %s1327_s23 = smov (!%p251_p3), 16  }
   0x9   : > { %1213 = vmatprep.mubr.msk.f32.mxu1 (!%p251_p3), %vm1321_vm0, %v1320_v0  ;;  %s1328_s24 = smov (!%p251_p3), 24  }
   0xe   : > { %s1499_s18 = smov (!%p303_p4, %s1310_s18), 1 }
   0xf   : > { %s1383_s22 = sshll.u32 %s1499_s18, 3  ;;  %s330_s11 = scalar_lea.vmem %s1492_s4, %s1499_s18 }
  0x10   : > { %s316_s25 = scalar_lea.vmem %s1489_s1, %s1383_s22  ;;  %s309_s28 = scalar_lea.vmem %s1488_s0, %s1383_s22  ;;  %v1175_v5 = vld [vmem:[%s330_s11] ss:$0 sm:$0xff] }
  0x11   : > { %v354_v2 = vld [vmem:[%s316_s25] sm:$0xff]  ;;  %s327_s6 = scalar_lea.vmem %s1491_s3, %s1383_s22  ;;  %s323_s15 = scalar_lea.vmem %s1490_s2, %s1383_s22 }
  0x12   : > { %1207 = vmatpush3.xpose.msk.msra.mxu0 %vm356_vm1, %v354_v2  ;;  %v353_v3 = vld [vmem:[%s309_s28] sm:$0xff]  ;;  %522 = vrot.lane.b32.xlu1 %v354_v2, %s1323_s7  ;;  %s1445_s18 = scalar_lea.vmem %s1493_s5, %s1383_s22  ;;  %s1326_s22 = smov 8  }
  0x13   : > { %v338_v4 = vld [vmem:[%s327_s6] sm:$0xff]  ;;  %1221 = vmatprep.subr.mxu0 %v1320_v0 }
  0x14   : > { %342 = vperm.xlu0 %1279, %v338_v4   ;;  %v1421_v18 = vld [vmem:[%s323_s15] sm:$0xff] }
  0x15   : > { %1209 = vmatmul.mubr.msk.f32.vlgmr.msra.gmra.mrb[0].mxu0 %vm356_vm1, %v353_v3  ;;  %1212 = vmatpush3.msra.mxu1 %v1421_v18 }
  0x16   : > { %1223 = vmatprep.mubr.msk.f32.mxu0 %vm1321_vm0, %v1320_v0  ;;  %520 = vrot.lane.b32.xlu1 %v353_v3, %s1323_s7 }
  0x17   : > { %1216 = vmatprep.subr.mxu1 %v1320_v0 }
  0x1a   : > { %696 = vrot.lane.b32.xlu1 %v354_v2, %s1324_s8 }
  0x1e   : > { %694 = vrot.lane.b32.xlu1 %v353_v3, %s1324_s8 }
  0x84   : > { %v523_v19 = vpop.permute.xlu1 %522 }
  0x88   : > { %v521_v20 = vpop.permute.xlu1 %520 }
  0x8c   : > { %v697_v21 = vpop.permute.xlu1 %696 }
  0x90   : > { %v695_v22 = vpop.permute.xlu1 %694 }
  0x93   : > { %v343_v6 = vpop.permute.xlu0 %342 }
  0x94   : > { %v1409_v7 = vmul.f32 %v1175_v5, %v343_v6 }
  0x96   : > { %vm352_vm2 = vcmp.eq.f32.partialorder %v1409_v7, 0.0 }
  0xe8   : > { %v429_v8 = vpop.f32.mrb[0].mxu0 }
  0xe9   : > { %v433_v9 = vmul.f32 0.35355338, %v429_v8  ;;  %v1210_v10 = vpop.f32.mrb[1].mxu0 }
  0xeb   : > { %v434_v11 = vsel %vm352_vm2, -1e+09, %v433_v9 }
  0xec   : > { %v435_v12 = vsel %vm356_vm1, %v434_v11, -inf }
  0xed   : > { %436 = vmax.xlane.f32.xlu0 %v435_v12 }
 0x103   : > { %867 = vrot.lane.b32.xlu0 %v353_v3, %s1325_s12 }
 0x17a   : > { %v437_v13 = vpop.xlane.xlu0 %436 }
 0x17b   : > { %v438_v14 = vsub.f32 %v434_v11, %v437_v13 }
 0x17d   : > { %v439_v15 = vmul.f32 1.442695, %v438_v14 }
 0x17e   : > { %v868_v27 = vpop.permute.xlu0 %867 }
 0x17f   : > { %1280 = vpow2.f32 %v439_v15 }
 0x189   : > { %v1281_v16 = vpop.eup %1280 }
 0x18a   : > { %v441_v17 = vsel %vm356_vm1, %v1281_v16, 0.0 }
 0x18b   : > { %442 = vadd.xlane.f32.xlu1 %v441_v17 }
 0x19c   : > { %869 = vrot.lane.b32.xlu1 %v354_v2, %s1325_s12 }
 0x218   : > { %v443_v23 = vpop.xlane.xlu1 %442 }
 0x219   : > { %1282 = vrcp.f32 %v443_v23 }
 0x21c   : > { %v870_v26 = vpop.permute.xlu1 %869 }
 0x223   : > { %v1283_v24 = vpop.eup %1282 }
 0x224   : > { %v445_v25 = vmul.f32 %v1283_v24, %v1281_v16 }
 0x226   : > { %1214 = vmatmul.mubr.msk.f32.vlgmr.msra.gmra.mrb[0].mxu1 %vm356_vm1, %v445_v25 }
 0x227   : > { %1217 = vmatpush3.xpose.msk.msra.mxu1 %vm356_vm1, %v523_v19  ;;  %1218 = vmatprep.mubr.msk.f32.mxu1 %vm1321_vm0, %v1320_v0 }
 0x228   : > { %1226 = vmatprep.subr.mxu1 %v1320_v0 }
 0x22a   : > { %1219 = vmatmul.mubr.msk.f32.vlgmr.msra.gmra.mrb[2].mxu1 %vm356_vm1, %v521_v20 }
 0x22b   : > { %1227 = vmatpush3.xpose.msk.msra.mxu1 %vm356_vm1, %v697_v21  ;;  %1228 = vmatprep.mubr.msk.f32.mxu1 %vm1321_vm0, %v1320_v0 }
 0x22c   : > { %1236 = vmatprep.subr.mxu1 %v1320_v0 }
 0x22e   : > { %1229 = vmatmul.mubr.msk.f32.vlgmr.msra.gmra.mrb[4].mxu1 %vm356_vm1, %v695_v22 }
 0x22f   : > { %1237 = vmatpush3.xpose.msk.msra.mxu1 %vm356_vm1, %v870_v26  ;;  %1238 = vmatprep.mubr.msk.f32.mxu1 %vm1321_vm0, %v1320_v0 }
 0x232   : > { %1239 = vmatmul.mubr.msk.f32.vlgmr.msra.gmra.mrb[6].mxu1 %vm356_vm1, %v868_v27 }
 0x2f9   : > { %v515_v28 = vpop.f32.mrb[0].mxu1 }
 0x2fa   : > { %519 = vst.msk [vmem:[%s1445_s18] sm:$0xff] %vm356_vm1, %v515_v28  ;;  %v1215_v29 = vpop.f32.mrb[1].mxu1 }
 0x2fd   : > { %v594_v30 = vpop.f32.mrb[2].mxu1 }
 0x2fe   : > { %v598_v31 = vmul.f32 0.35355338, %v594_v30  ;;  %v1220_v32 = vpop.f32.mrb[3].mxu1 }
 0x300   : > { %v599_v33 = vsel %vm352_vm2, -1e+09, %v598_v31 }
 0x301   : > { %v768_v34 = vpop.f32.mrb[4].mxu1  ;;  %v600_v35 = vsel %vm356_vm1, %v599_v33, -inf }
 0x302   : > { %v772_v36 = vmul.f32 0.35355338, %v768_v34  ;;  %601 = vmax.xlane.f32.xlu1 %v600_v35  ;;  %v1230_v37 = vpop.f32.mrb[5].mxu1 }
 0x304   : > { %v773_v38 = vsel %vm352_vm2, -1e+09, %v772_v36 }
 0x305   : > { %v941_v39 = vpop.f32.mrb[6].mxu1  ;;  %v774_v40 = vsel %vm356_vm1, %v773_v38, -inf }
 0x306   : > { %v945_v41 = vmul.f32 0.35355338, %v941_v39  ;;  %775 = vmax.xlane.f32.xlu0 %v774_v40  ;;  %v1240_v42 = vpop.f32.mrb[7].mxu1 }
 0x308   : > { %v946_v43 = vsel %vm352_vm2, -1e+09, %v945_v41 }
 0x309   : > { %v947_v44 = vsel %vm356_vm1, %v946_v43, -inf }
 0x30a   : > { %948 = vmax.xlane.f32.xlu1 %v947_v44 }
 0x31b   : > { %785 = vrot.lane.b32.xlu1 %v1421_v18, %s1324_s8 }
 0x31c   : > { %612 = vrot.lane.b32.xlu0 %v1421_v18, %s1323_s7 }
 0x38f   : > { %v602_v45 = vpop.xlane.xlu1 %601 }
 0x390   : > { %v603_v46 = vsub.f32 %v599_v33, %v602_v45 }
 0x392   : > { %v604_v47 = vmul.f32 1.442695, %v603_v46 }
 0x393   : > { %v776_v48 = vpop.xlane.xlu0 %775 }
 0x394   : > { %1284 = vpow2.f32 %v604_v47  ;;  %v777_v49 = vsub.f32 %v773_v38, %v776_v48 }
 0x396   : > { %v778_v50 = vmul.f32 1.442695, %v777_v49 }
 0x397   : > { %v949_v51 = vpop.xlane.xlu1 %948  ;;  %v613_v60 = vpop.permute.xlu0 %612 }
 0x398   : > { %1286 = vpow2.f32 %v778_v50  ;;  %v950_v52 = vsub.f32 %v946_v43, %v949_v51  ;;  %1222 = vmatpush3.msra.mxu0 %v613_v60 }
 0x399   : > { %1231 = vmatprep.subr.mxu0 %v1320_v0 }
 0x39a   : > { %v951_v53 = vmul.f32 1.442695, %v950_v52 }
 0x39b   : > { %v786_v61 = vpop.permute.xlu1 %785 }
 0x39c   : > { %1288 = vpow2.f32 %v951_v53 }
 0x39e   : > { %v1285_v54 = vpop.eup %1284 }
 0x39f   : > { %v606_v55 = vsel %vm356_vm1, %v1285_v54, 0.0 }
 0x3a0   : > { %607 = vadd.xlane.f32.xlu1 %v606_v55 }
 0x3a2   : > { %v1287_v56 = vpop.eup %1286 }
 0x3a3   : > { %v780_v57 = vsel %vm356_vm1, %v1287_v56, 0.0 }
 0x3a4   : > { %781 = vadd.xlane.f32.xlu1 %v780_v57 }
 0x3a6   : > { %v1289_v58 = vpop.eup %1288 }
 0x3a7   : > { %v953_v59 = vsel %vm356_vm1, %v1289_v58, 0.0 }
 0x3a8   : > { %954 = vadd.xlane.f32.xlu1 %v953_v59 }
 0x3b9   : > { %958 = vrot.lane.b32.xlu1 %v1421_v18, %s1325_s12 }
 0x42d   : > { %v608_v62 = vpop.xlane.xlu1 %607 }
 0x42e   : > { %1290 = vrcp.f32 %v608_v62 }
 0x431   : > { %v782_v63 = vpop.xlane.xlu1 %781 }
 0x432   : > { %1292 = vrcp.f32 %v782_v63 }
 0x435   : > { %v955_v1 = vpop.xlane.xlu1 %954 }
 0x436   : > { %1294 = vrcp.f32 %v955_v1 }
 0x438   : > { %v1291_v2 = vpop.eup %1290 }
 0x439   : > { %v610_v3 = vmul.f32 %v1291_v2, %v1285_v54  ;;  %v959_v6 = vpop.permute.xlu1 %958 }
 0x43b   : > { %1224 = vmatmul.mubr.msk.f32.vlgmr.msra.gmra.mrb[2].mxu0 %vm356_vm1, %v610_v3 }
 0x43c   : > { %v1293_v4 = vpop.eup %1292  ;;  %1232 = vmatpush3.msra.mxu0 %v786_v61  ;;  %1233 = vmatprep.mubr.msk.f32.mxu0 %vm1321_vm0, %v1320_v0 }
 0x43d   : > { %v784_v5 = vmul.f32 %v1293_v4, %v1287_v56  ;;  %1241 = vmatprep.subr.mxu0 %v1320_v0 }
 0x43f   : > { %1234 = vmatmul.mubr.msk.f32.vlgmr.msra.gmra.mrb[4].mxu0 %vm356_vm1, %v784_v5 }
 0x440   : > { %v1295_v7 = vpop.eup %1294  ;;  %1242 = vmatpush3.msra.mxu0 %v959_v6  ;;  %1243 = vmatprep.mubr.msk.f32.mxu0 %vm1321_vm0, %v1320_v0 }
 0x441   : > { %v957_v8 = vmul.f32 %v1295_v7, %v1289_v58 }
 0x443   : > { %1244 = vmatmul.mubr.msk.f32.vlgmr.msra.gmra.mrb[6].mxu0 %vm356_vm1, %v957_v8 }
 0x50e   : > { %v684_v9 = vpop.f32.mrb[2].mxu0 }
 0x50f   : > { %689 = vrot.lane.b32.xlu0 %v684_v9, %s1326_s22  ;;  %v1225_v10 = vpop.f32.mrb[3].mxu0 }
 0x512   : > { %v857_v11 = vpop.f32.mrb[4].mxu0 }
 0x513   : > { %862 = vrot.lane.b32.xlu1 %v857_v11, %s1327_s23  ;;  %v1235_v12 = vpop.f32.mrb[5].mxu0 }
 0x516   : > { %v1030_v13 = vpop.f32.mrb[6].mxu0 }
 0x517   : > { %1035 = vrot.lane.b32.xlu0 %v1030_v13, %s1328_s24  ;;  %v1245_v14 = vpop.f32.mrb[7].mxu0 }
 0x581   : > { %v690_v0 = vpop.permute.xlu0 %689 }
 0x582   : > { %693 = vst.msk [vmem:[%s1445_s18] sm:$0xff] %vm692_vm3, %v690_v0 }
 0x585   : > { %v863_v15 = vpop.permute.xlu1 %862 }
 0x586   : > { %866 = vst.msk [vmem:[%s1445_s18] sm:$0xff] %vm865_vm4, %v863_v15 }
 0x589   : > { %v1036_v16 = vpop.permute.xlu0 %1035 }
 0x58a   : > { %1039 = vst.msk [vmem:[%s1445_s18] sm:$0xff] %vm1038_vm5, %v1036_v16 }
 0x58b PF: > { %s15_s20 = sadd.s32 1, %s1318_s20   ;;  %s1494_s18 = smov %s1314_s19 }
 0x58c   : > { %p12_p5 = scmp.ge.s32.totalorder %s15_s20, 4   ;;  %s1495_s19 = smov %s1497_s21 }
 0x58e   :  { %14 = sbr.rel (!%p12_p5) target bundleno = 2 (0x2), region = 82 }

// kernel: decoder_layer_forward.16
= control target key start
LH: loop header
LB: loop body
LE: loop exit
PB: predicated region body
PF: predicated region fallthrough
CT: control target
= control target key end

     0   :  { %vm22_vm0 = vcmask 261120   ;;  %vm178_vm5 = vcmask 523264   ;;  %s292_s0 = inlined_call_operand.vmem [shape: f32[16,32], index: 0, kind: input, shape index: {}]   ;;  %s293_s1 = inlined_call_operand.vmem [shape: f32[32,64], index: 1, kind: input, shape index: {}]   ;;  %s294_s3 = inlined_call_operand.vmem [shape: f32[1,32], index: 3, kind: input, shape index: {}]   ;;  %s295_s4 = inlined_call_operand.vmem [shape: f32[1,32], index: 4, kind: input, shape index: {}]   ;;  %s296_s2 = inlined_call_operand.vmem [shape: f32[1,64], index: 2, kind: input, shape index: {}]   ;;  %s297_s5 = inlined_call_operand.vmem [shape: f32[16,64], index: 5, kind: output, shape index: {}]  }
   0x1   :  { %v20_v0 = vld [vmem:[%s292_s0] sm:$0xff]  ;;  %v21_v1 = vld [vmem:[%s292_s0 + $0x8] sm:$0xff]  ;;  %v86_v16 = vld [vmem:[%s293_s1 + $0x10] sm:$0xff] }
   0x2   :  { %v23_v2 = vsel %vm22_vm0, %v20_v0, 0.0  ;;  %v26_v3 = vsel %vm22_vm0, %v21_v1, 0.0  ;;  %v84_v14 = vld [vmem:[%s293_s1] sm:$0xff]  ;;  %v85_v15 = vld [vmem:[%s293_s1 + $0x8] sm:$0xff]  ;;  %v87_v18 = vld [vmem:[%s293_s1 + $0x18] sm:$0xff] }
   0x3   :  { %24 = vadd.xlane.f32.xlu0 %v23_v2  ;;  %v207_v17 = vpack.c.bf16 %v85_v15, %v84_v14  ;;  %v211_v19 = vpack.c.bf16 %v87_v18, %v86_v16  ;;  %v185_v37 = vld [vmem:[%s294_s3] ss:$0 sm:$0xff] }
   0x4   :  { %v186_v39 = vld [vmem:[%s295_s4] ss:$0 sm:$0xff] }
   0x5   :  { %208 = vmatprep.subr.bf16.mxu0 %v207_v17  ;;  %v187_v46 = vld [vmem:[%s296_s2] ss:$0 sm:$0xff] }
   0x6   :  { %210 = vmatpush3.bf16.msra.mxu0 %v207_v17 }
   0x7   :  { %27 = vadd.xlane.f32.xlu0 %v26_v3  ;;  %212 = vmatprep.subr.bf16.mxu0 %v211_v19 }
   0xa   :  { %214 = vmatpush3.bf16.msra.mxu0 %v211_v19 }
  0x90   :  { %v25_v4 = vpop.xlane.xlu0 %24 }
  0x91   :  { %v30_v5 = vmul.f32 0.03125, %v25_v4 }
  0x93   :  { %v32_v6 = vsub.f32 %v20_v0, %v30_v5 }
  0x94   :  { %v28_v7 = vpop.xlane.xlu0 %27 }
  0x95   :  { %v31_v8 = vmul.f32 0.03125, %v28_v7  ;;  %v34_v9 = vmul.f32 %v32_v6, %v32_v6 }
  0x97   :  { %v33_v10 = vsub.f32 %v21_v1, %v31_v8  ;;  %v36_v11 = vsel %vm22_vm0, %v34_v9, 0.0 }
  0x98   :  { %37 = vadd.xlane.f32.xlu1 %v36_v11 }
  0x99   :  { %v35_v12 = vmul.f32 %v33_v10, %v33_v10 }
  0x9b   :  { %v39_v13 = vsel %vm22_vm0, %v35_v12, 0.0 }
  0x9c   :  { %40 = vadd.xlane.f32.xlu1 %v39_v13 }
 0x125   :  { %v38_v20 = vpop.xlane.xlu1 %37 }
 0x126   :  { %v42_v21 = vmul.f32 0.032258064, %v38_v20 }
 0x128   :  { %215 = vrsqrt.f32 %v42_v21  ;;  %vm46_vm1 = vcmp.eq.f32.partialorder %v42_v21, inf  ;;  %v49_v26 = vand.u32 2147483648, %v42_v21  ;;  %vm48_vm2 = vcmp.eq.f32.partialorder %v42_v21, 0.0 }
 0x129   :  { %v41_v22 = vpop.xlane.xlu1 %40 }
 0x12a   :  { %v43_v23 = vmul.f32 0.032258064, %v41_v22 }
 0x12c   :  { %217 = vrsqrt.f32 %v43_v23  ;;  %vm53_vm3 = vcmp.eq.f32.partialorder %v43_v23, inf  ;;  %v56_v32 = vand.u32 2147483648, %v43_v23  ;;  %vm55_vm4 = vcmp.eq.f32.partialorder %v43_v23, 0.0 }
 0x132   :  { %v216_v24 = vpop.eup %215 }
 0x133   :  { %v45_v25 = vmul.f32 %v216_v24, %v42_v21 }
 0x135   :  { %v47_v27 = vsel %vm46_vm1, %v42_v21, %v45_v25 }
 0x136   :  { %v218_v28 = vpop.eup %217  ;;  %v50_v29 = vsel %vm48_vm2, %v49_v26, %v47_v27 }
 0x137   :  { %v52_v30 = vmul.f32 %v218_v28, %v43_v23  ;;  %v58_v31 = vadd.f32 1e-06, %v50_v29 }
 0x139   :  { %v54_v33 = vsel %vm53_vm3, %v43_v23, %v52_v30  ;;  %219 = vrcp.f32 %v58_v31 }
 0x13a   :  { %v57_v34 = vsel %vm55_vm4, %v56_v32, %v54_v33 }
 0x13b   :  { %v59_v35 = vadd.f32 1e-06, %v57_v34 }
 0x13d   :  { %221 = vrcp.f32 %v59_v35 }
 0x143   :  { %v220_v36 = vpop.eup %219 }
 0x144   :  { %v65_v38 = vmul.f32 %v220_v36, %v32_v6 }
 0x146   :  { %v73_v40 = vmul.f32 %v185_v37, %v65_v38 }
 0x147   :  { %v222_v41 = vpop.eup %221 }
 0x148   :  { %v66_v42 = vmul.f32 %v222_v41, %v33_v10  ;;  %v82_v43 = vadd.f32 %v186_v39, %v73_v40 }
 0x14a   :  { %v74_v44 = vmul.f32 %v185_v37, %v66_v42  ;;  %204 = vmatprep.mubr.msk.f32.mxu0 %vm22_vm0, %v82_v43 }
 0x14c   :  { %v83_v45 = vadd.f32 %v186_v39, %v74_v44 }
 0x14e   :  { %205 = vmatmul.mubr.msk.f32.vlgmr.msra.gmra.mrb[0].mxu0 %vm22_vm0, %v83_v45 }
 0x221   :  { %v206_v47 = vpop.f32.mrb[0].mxu0 }
 0x222   :  { %v173_v48 = vadd.f32 %v206_v47, %v187_v46  ;;  %v167_v49 = vpop.f32.mrb[1].mxu0 }
 0x223   :  { %v168_v50 = vadd.f32 %v187_v46, %v167_v49 }
 0x224   :  { %v177_v51 = vmax.f32 %v173_v48, 0.0 }
 0x225   :  { %v176_v52 = vmax.f32 %v168_v50, 0.0 }
 0x226   :  { %180 = vst.msk [vmem:[%s297_s5 + $0x8] sm:$0xff] %vm178_vm5, %v177_v51 }
 0x227   :  { %179 = vst.msk [vmem:[%s297_s5] sm:$0xff] %vm178_vm5, %v176_v52 }

// kernel: decoder_layer_forward.17
= control target key start
LH: loop header
LB: loop body
LE: loop exit
PB: predicated region body
PF: predicated region fallthrough
CT: control target
= control target key end

     0   :  { %vm37_vm0 = vcmask 523264   ;;  %vm22_vm1 = vcmask 261120   ;;  %v236_v5 = vmov 0.0   ;;  %s324_s0 = inlined_call_operand.vmem [shape: f32[16,64], index: 0, kind: input, shape index: {}]   ;;  %s325_s1 = inlined_call_operand.vmem [shape: f32[64,32], index: 1, kind: input, shape index: {}]   ;;  %s326_s2 = inlined_call_operand.vmem [shape: f32[1,32], index: 2, kind: input, shape index: {}]   ;;  %s327_s3 = inlined_call_operand.vmem [shape: f32[16,32], index: 3, kind: input, shape index: {}]   ;;  %s328_s4 = inlined_call_operand.hbm [shape: f32[16,32], index: 4, kind: output, shape index: {}]  }
   0x1   :  { %v29_v0 = vld [vmem:[%s325_s1] sm:$0xff]  ;;  %v30_v1 = vld [vmem:[%s325_s1 + $0x8] sm:$0xff]  ;;  %v31_v2 = vld [vmem:[%s325_s1 + $0x10] sm:$0xff]  ;;  %24 = vst.msk [vmem:[#allocation2 + $0x8] sm:$0xff] %vm22_vm1, %v236_v5 }
   0x2   :  { %v192_v3 = vpack.c.bf16 %v30_v1, %v29_v0  ;;  %v32_v4 = vld [vmem:[%s325_s1 + $0x18] sm:$0xff]  ;;  %23 = vst.msk [vmem:[#allocation2] sm:$0xff] %vm22_vm1, %v236_v5  ;;  %v33_v7 = vld [vmem:[%s325_s1 + $0x20] sm:$0xff]  ;;  %v34_v8 = vld [vmem:[%s325_s1 + $0x28] sm:$0xff] }
   0x3   :  { %v196_v6 = vpack.c.bf16 %v32_v4, %v31_v2  ;;  %v27_v9 = vld [vmem:[%s324_s0] sm:$0xff] }
   0x4   :  { %193 = vmatprep.subr.bf16.mxu0 %v192_v3  ;;  %189 = vmatprep.mubr.msk.f32.mxu0 %vm37_vm0, %v27_v9 }
   0x5   :  { %9 = vsyncpa [#allocation4], 0  ;;  %195 = vmatpush3.bf16.msra.mxu0 %v192_v3  ;;  %v200_v10 = vpack.c.bf16 %v34_v8, %v33_v7  ;;  %v35_v11 = vld [vmem:[%s325_s1 + $0x30] sm:$0xff]  ;;  %v36_v12 = vld [vmem:[%s325_s1 + $0x38] sm:$0xff] }
   0x6   :  { %197 = vmatprep.subr.bf16.mxu0 %v196_v6  ;;  %v204_v13 = vpack.c.bf16 %v36_v12, %v35_v11  ;;  %v28_v14 = vld [vmem:[%s324_s0 + $0x8] sm:$0xff]  ;;  %v162_v21 = vld [vmem:[%s326_s2] ss:$0 sm:$0xff]  ;;  %s237_s0 = smov [#allocation3]  }
   0x7   :  { %v139_v23 = vld [vmem:[%s327_s3 + $0x8] sm:$0xff]  ;;  %s149_s12 = sshll.u32 %s237_s0, 4  ;;  %v138_v26 = vld [vmem:[%s327_s3] sm:$0xff]  ;;  %s150_s12 = int_to_ptr.vmem [resolvable:$true] %s149_s12 }
   0x8   :  { %v26_v15 = vld [vmem:[#allocation2 + $0x8] sm:$0xff]  ;;  %s212_s2 = scalar_lea.vmem %s150_s12, 256  ;;  %p217_p1 = scmp.lt.s32.totalorder %s150_s12, %s150_s12 }
   0x9   :  { %199 = vmatpush3.bf16.msra.mxu0 %v196_v6  ;;  %v25_v16 = vld [vmem:[#allocation2] sm:$0xff]  ;;  %p213_p0 = scmp.ne.s32.totalorder %s150_s12, %s212_s2  ;;  %p218_p2 = scmp.lt.s32.totalorder %s212_s2, %s212_s2 }
   0xa   :  { %201 = vmatprep.subr.bf16.mxu0 %v200_v10 }
   0xb   :  { %p219_p3 = por %p218_p2, %p217_p1 }
   0xd   :  { %203 = vmatpush3.bf16.msra.mxu0 %v200_v10  ;;  %p220_p4 = pnand %p219_p3, %p213_p0 }
   0xe   :  { %205 = vmatprep.subr.bf16.mxu0 %v204_v13 }
  0x11   :  { %207 = vmatpush3.bf16.msra.mxu0 %v204_v13 }
  0x14   :  { %190 = vmatmul.mubr.msk.f32.vlgmr.msra.gmra.mrb[0].mxu0 %vm37_vm0, %v28_v14 }
  0xe7   :  { %v191_v17 = vpop.f32.mrb[0].mxu0 }
  0xe8   :  { %v120_v18 = vadd.f32 %v191_v17, %v26_v15  ;;  %v110_v19 = vpop.f32.mrb[1].mxu0 }
  0xe9   :  { %v119_v20 = vadd.f32 %v110_v19, %v25_v16 }
  0xea   :  { %123 = vst.msk [vmem:[#allocation2 + $0x8] sm:$0xff] %vm22_vm1, %v120_v18 }
  0xeb   :  { %122 = vst.msk [vmem:[#allocation2] sm:$0xff] %vm22_vm1, %v119_v20 }
  0xf1   :  { %v128_v22 = vld [vmem:[#allocation2 + $0x8] sm:$0xff] }
  0xf2   :  { %v127_v24 = vld [vmem:[#allocation2] sm:$0xff]  ;;  %v137_v25 = vadd.f32 %v162_v21, %v128_v22 }
  0xf3   :  { %v136_v27 = vadd.f32 %v162_v21, %v127_v24 }
  0xf4   :  { %v141_v28 = vadd.f32 %v139_v23, %v137_v25 }
  0xf5   :  { %v140_v29 = vadd.f32 %v138_v26, %v136_v27 }
  0xf6   :  { %143 = vst.msk [vmem:[#allocation3 + $0x8] sm:$0xff] %vm22_vm1, %v141_v28 }
  0xf7   :  { %142 = vst.msk [vmem:[#allocation3] sm:$0xff] %vm22_vm1, %v140_v29 }
  0xf8   :  { %223 = shalt.err (!%p220_p4)
}
  0xf9   :  { %s224_s17 = scalar_lea.hbm %s328_s4, 256 }
  0xfa   :  { %p225_p5 = scmp.ne.s32.totalorder %s328_s4, %s224_s17  ;;  %p228_p6 = scmp.lt.u32.totalorder %s224_s17, %s328_s4 }
  0xfc   :  { %p230_p7 = pnand %p228_p6, %p225_p5 }
  0xfe   :  { %233 = shalt.err (!%p230_p7)
}
  0xff   :  { %s238_s21 = smov 128   ;;  %s239_s22 = smov 8  }
 0x100   :  { %155 = dma.vmem_to_hbm [thread:$0]  %s150_s12, 256, %s328_s4, [#allocation4], %s238_s21, %s238_s21, %s239_s22  }
 0x101   :  { %234 = dma.done.wait [#allocation4], 256  }
 0x102   :  { %235 = vsyncadd [#allocation4], 4294967040 }
 0x103   :  { %159 = vsyncpa [#allocation4], 1 }

// kernel: decoder_layer_forward.13
= control target key start
LH: loop header
LB: loop body
LE: loop exit
PB: predicated region body
PF: predicated region fallthrough
CT: control target
= control target key end

     0   :  { %vm29_vm0 = vcmask 261120   ;;  %s225_s1 = inlined_call_operand.vmem [shape: f32[32,64], index: 1, kind: input, shape index: {}]   ;;  %s226_s0 = inlined_call_operand.vmem [shape: f32[16,32], index: 0, kind: input, shape index: {}]   ;;  %s227_s2 = inlined_call_operand.vmem [shape: f32[1,64], index: 2, kind: input, shape index: {}]   ;;  %s228_s3 = inlined_call_operand.vmem [shape: f32[16,32], index: 3, kind: output, shape index: {0}]   ;;  %s229_s4 = inlined_call_operand.vmem [shape: f32[16,32], index: 4, kind: output, shape index: {1}]  }
   0x1   :  { %v18_v0 = vld [vmem:[%s225_s1] sm:$0xff]  ;;  %v19_v1 = vld [vmem:[%s225_s1 + $0x8] sm:$0xff]  ;;  %v20_v2 = vld [vmem:[%s225_s1 + $0x10] sm:$0xff] }
   0x2   :  { %v151_v3 = vpack.c.bf16 %v19_v1, %v18_v0  ;;  %v21_v4 = vld [vmem:[%s225_s1 + $0x18] sm:$0xff]  ;;  %v16_v5 = vld [vmem:[%s226_s0] sm:$0xff]  ;;  %v17_v7 = vld [vmem:[%s226_s0 + $0x8] sm:$0xff]  ;;  %s160_s0 = smov 96  }
   0x3   :  { %v155_v6 = vpack.c.bf16 %v21_v4, %v20_v2  ;;  %148 = vmatprep.mubr.msk.f32.mxu0 %vm29_vm0, %v16_v5  ;;  %v131_v8 = vld [vmem:[%s227_s2] ss:$0 sm:$0xff] }
   0x4   :  { %152 = vmatprep.subr.bf16.mxu0 %v151_v3 }
   0x5   :  { %154 = vmatpush3.bf16.msra.mxu0 %v151_v3 }
   0x6   :  { %156 = vmatprep.subr.bf16.mxu0 %v155_v6 }
   0x9   :  { %158 = vmatpush3.bf16.msra.mxu0 %v155_v6 }
   0xc   :  { %149 = vmatmul.mubr.msk.f32.vlgmr.msra.gmra.mrb[0].mxu0 %vm29_vm0, %v17_v7 }
  0xdf   :  { %v150_v9 = vpop.f32.mrb[0].mxu0 }
  0xe0   :  { %v108_v10 = vadd.f32 %v150_v9, %v131_v8  ;;  %v102_v11 = vpop.f32.mrb[1].mxu0 }
  0xe1   :  { %v103_v12 = vadd.f32 %v131_v8, %v102_v11 }
  0xe2   :  { %112 = vst.msk [vmem:[%s228_s3 + $0x8] sm:$0xff] %vm29_vm0, %v108_v10 }
  0xe3   :  { %111 = vst.msk [vmem:[%s228_s3] sm:$0xff] %vm29_vm0, %v103_v12  ;;  %115 = vrot.lane.b32.xlu0 %v103_v12, %s160_s0 }
  0xe7   :  { %117 = vrot.lane.b32.xlu0 %v108_v10, %s160_s0 }
 0x155   :  { %v116_v13 = vpop.permute.xlu0 %115 }
 0x156   :  { %121 = vst.msk [vmem:[%s229_s4] sm:$0xff] %vm29_vm0, %v116_v13 }
 0x159   :  { %v118_v14 = vpop.permute.xlu0 %117 }
 0x15a   :  { %122 = vst.msk [vmem:[%s229_s4 + $0x8] sm:$0xff] %vm29_vm0, %v118_v14 }

</bundles_post_ra>
